<compile_context>
chip_gen: v7x
topology: tpu7x:2x2x1
jax: 0.10.0
libtpu: 0.0.40
codegen_flags: <defaults>
</compile_context>

<pallas_src>
import functools

import jax
import jax.numpy as jnp
from jax.experimental import pallas as pl
from jax.experimental.pallas import tpu as pltpu


# ----------------------------------------------------------------------------
# Pallas kernel: channel-major matmul tile with fused residual(s) + ReLU
#   out[Cout, Pt] = W[Cout, K] @ X[K, Pt]  (+ sum_i scale_i * R_i[Cout, Pt]) (+ReLU)
# ----------------------------------------------------------------------------
def _conv_kernel(*refs, relu: bool, res_scales: tuple):
    w_ref = refs[0]            # (Cout, K)        bf16
    x_ref = refs[1]            # (1, K, Pt)       bf16
    o_ref = refs[-1]           # (1, Cout, Pt)    f32
    r_refs = refs[2:-1]        # each (1, Cout, Pt) f32

    acc = jnp.dot(w_ref[...], x_ref[0], preferred_element_type=jnp.float32)
    for r_ref, s in zip(r_refs, res_scales):
        r = r_ref[0]
        acc = acc + (r if s == 1.0 else s * r)
    if relu:
        acc = jnp.maximum(acc, 0.0)
    o_ref[0] = acc.astype(o_ref.dtype)


def _pick_p_tile(P, target=2048):
    """Largest multiple-of-128 divisor of P that is <= target (else full P)."""
    if P <= target:
        return P
    t = (target // 128) * 128
    while t >= 128:
        if P % t == 0:
            return t
        t -= 128
    return P


def matmul_cm(w, x, *, relu=False, residuals=(), p_tile=2048):
    """Channel-major conv-as-matmul.

    w: (Cout, K) float32, x: (N, K, P) any float, residuals: seq of
    ((N, Cout, P) float32 array, python-float scale).
    Returns (N, Cout, P) float32.
    """
    N, K, P = x.shape
    Cout = w.shape[0]
    Pt = _pick_p_tile(P, p_tile)
    grid = (N, P // Pt)

    w_bf = w.astype(jnp.bfloat16)
    x_bf = x.astype(jnp.bfloat16)
    res_arrays = [r.astype(jnp.float32) for r, _ in residuals]
    res_scales = tuple(float(s) for _, s in residuals)

    in_specs = [
        pl.BlockSpec((Cout, K), lambda n, p: (0, 0)),          # weights (resident)
        pl.BlockSpec((1, K, Pt), lambda n, p: (n, 0, p)),       # activations
    ] + [pl.BlockSpec((1, Cout, Pt), lambda n, p: (n, 0, p))    # fused residuals
         for _ in res_arrays]

    return pl.pallas_call(
        functools.partial(_conv_kernel, relu=relu, res_scales=res_scales),
        out_shape=jax.ShapeDtypeStruct((N, Cout, P), jnp.float32),
        grid=grid,
        in_specs=in_specs,
        out_specs=pl.BlockSpec((1, Cout, Pt), lambda n, p: (n, 0, p)),
        compiler_params=pltpu.CompilerParams(
            dimension_semantics=("parallel", "parallel"),
            vmem_limit_bytes=32 * 1024 * 1024),
    )(w_bf, x_bf, *res_arrays)


# ----------------------------------------------------------------------------
# Conv wrappers (padding / im2col in JAX, matmul + epilogue in Pallas)
# ----------------------------------------------------------------------------
def conv3x3_reflect_cm(x, w, *, residuals=(), relu=False):
    """x: (N, Cin, H, W), w: (Cout, Cin, 3, 3); reflect pad=1, bias=False.
    Returns flat-spatial (N, Cout, H*W)."""
    N, Cin, H, W = x.shape
    Cout = w.shape[0]
    xb = x.astype(jnp.bfloat16)                       # halve im2col HBM bytes
    xp = jnp.pad(xb, ((0, 0), (0, 0), (1, 1), (1, 1)), mode="reflect")
    # single (N, 9*Cin, H*W) im2col; tap order k = ci*9 + kh*3 + kw matches
    # the torch (Cout, Cin, 3, 3) weight reshape below.
    taps = jnp.stack([xp[:, :, kh:kh + H, kw:kw + W]
                      for kh in range(3) for kw in range(3)], axis=2)
    patches = taps.reshape(N, Cin * 9, H * W)
    return matmul_cm(w.reshape(Cout, Cin * 9), patches,
                     relu=relu, residuals=residuals)


def conv1x1_cm(x_flat, w, *, relu=False, residuals=()):
    """x_flat: (N, Cin, P), w: (Cout, Cin); bias=False."""
    return matmul_cm(w, x_flat, relu=relu, residuals=residuals)


# ----------------------------------------------------------------------------
# FFC building blocks (channel-major throughout)
# ----------------------------------------------------------------------------
def fourier_unit_cm(x, w):
    """x: (N, C, H, W), w: (2C, 2C). rfft2 -> 1x1 conv + ReLU -> irfft2 (ortho).

    Real/imag are laid out as channel BLOCKS [real | imag] (the torch module
    interleaves [r0,i0,r1,i1,...]; the two are equivalent under a fixed row/col
    permutation of the conv weight, applied here at init time)."""
    N, C, H, W = x.shape
    f = jnp.fft.rfft2(x, axes=(2, 3), norm="ortho")         # (N, C, H, Wf)
    Wf = f.shape[-1]
    stacked = jnp.concatenate([f.real, f.imag], axis=1)     # (N, 2C, H, Wf)
    y = conv1x1_cm(stacked.reshape(N, 2 * C, H * Wf), w, relu=True)
    y = y.reshape(N, 2 * C, H, Wf)
    fc = jax.lax.complex(y[:, :C], y[:, C:])
    return jnp.fft.irfft2(fc, s=(H, W), axes=(2, 3), norm="ortho")


def spectral_transform_cm(x, p, residuals=()):
    """x: (N, in_cg, H, W) -> (N, out_cg, H*W). stride=1, enable_lfu=True."""
    N, Cin, H, W = x.shape
    y = conv1x1_cm(x.reshape(N, Cin, H * W), p["st_conv1"], relu=True)
    c = y.shape[1]
    y4 = y.reshape(N, c, H, W)

    fu = fourier_unit_cm(y4, p["fu_w"])

    # Local Fourier Unit: take c//4 channels, split H and W in 2, stack on C.
    xs = y4[:, : c // 4]
    xs = jnp.concatenate(jnp.split(xs, 2, axis=2), axis=1)
    xs = jnp.concatenate(jnp.split(xs, 2, axis=3), axis=1)
    xs = fourier_unit_cm(xs, p["lfu_w"])
    xs = jnp.tile(xs, (1, 1, 2, 2))

    total = y4 + fu + xs                                    # XLA fuses these adds
    return conv1x1_cm(total.reshape(N, c, H * W), p["st_conv2"],
                      relu=False, residuals=residuals)


def ffc_layer_cm(x_l, x_g, p, *, extra_res_l=None, extra_res_g=None):
    """One FFC_BN_ACT (norm=identity, act=identity since activation='linear').

    extra_res_* : optional (flat_array, scale) fused into the branch epilogues.
    Returns (N, out_cl, H, W), (N, out_cg, H, W)."""
    N, _, H, W = x_l.shape
    out_cl = p["g2l"].shape[0]

    # Fused l2l + l2g: both consume x_l -> single 3x3 conv, split along Cout.
    y = conv3x3_reflect_cm(x_l, p["l2lg"])                  # (N, out_cl+out_cg, HW)
    y_ll, y_lg = y[:, :out_cl], y[:, out_cl:]

    res_l = [(y_ll, 1.0)]
    res_g = [(y_lg, 1.0)]
    if extra_res_l is not None:
        res_l.append(extra_res_l)
    if extra_res_g is not None:
        res_g.append(extra_res_g)

    # out_l = conv3x3(x_l,l2l) + conv3x3(x_g,g2l) [+extra]  — fused epilogue
    out_l = conv3x3_reflect_cm(x_g, p["g2l"], residuals=res_l)
    # out_g = conv3x3(x_l,l2g) + SpectralTransform(x_g) [+extra] — fused epilogue
    out_g = spectral_transform_cm(x_g, p["g2g"], residuals=res_g)

    return (out_l.reshape(N, out_cl, H, W),
            out_g.reshape(N, out_g.shape[1], H, W))


def ffc_block_forward(gen_ft, mask, params, *, global_in_num):
    """FFCBlock.forward. gen_ft: (N, C, H, W) NCHW; mask is unused."""
    del mask  # unused in the reference forward pass
    x = gen_ft.astype(jnp.float32)
    N, C, H, W = x.shape
    x_l = x[:, :-global_in_num]
    x_g = x[:, -global_in_num:]

    # conv1 (first FFC_BN_ACT)
    y_l, y_g = ffc_layer_cm(x_l, x_g, params["conv1"])

    # conv2 (second FFC_BN_ACT), with the three chained residual adds
    # (FFCResnetBlock id, FFCBlock id, + gen_ft.float()) folded into the conv
    # epilogues: out = 3*x + conv2_output.
    res_l = (x_l.reshape(N, -1, H * W), 3.0)
    res_g = (x_g.reshape(N, -1, H * W), 3.0)
    z_l, z_g = ffc_layer_cm(y_l, y_g, params["conv2"],
                            extra_res_l=res_l, extra_res_g=res_g)

    return jnp.concatenate([z_l, z_g], axis=1)              # NCHW, ConcatTupleLayer


# ----------------------------------------------------------------------------
# Deterministic parameter init (shapes follow FFCResnetBlock(dim, ratio=0.75))
# ----------------------------------------------------------------------------
def init_params(key, dim, ratio=0.75):
    in_cg = int(dim * ratio)
    in_cl = dim - in_cg
    out_cg, out_cl = in_cg, in_cl
    c = out_cg // 2

    keys = jax.random.split(key, 14)

    def w3(k, co, ci):   # torch Conv2d layout (Cout, Cin, 3, 3)
        return jax.random.normal(k, (co, ci, 3, 3), jnp.float32) * 0.1

    def w1(k, co, ci):   # 1x1 conv as (Cout, Cin)
        return jax.random.normal(k, (co, ci), jnp.float32) * 0.1

    def layer(ks):
        return dict(
            # l2l and l2g fused along Cout (both consume x_l).
            l2lg=jnp.concatenate([w3(ks[0], out_cl, in_cl),
                                  w3(ks[1], out_cg, in_cl)], axis=0),
            g2l=w3(ks[2], out_cl, in_cg),
            g2g=dict(
                st_conv1=w1(ks[3], c, in_cg),
                # spectral 1x1 weights generated directly in [real|imag]
                # block layout (== torch interleaved layout up to a fixed
                # row/col permutation applied at init).
                fu_w=w1(ks[4], 2 * c, 2 * c),
                lfu_w=w1(ks[5], 2 * c, 2 * c),
                st_conv2=w1(ks[6], out_cg, c),
            ),
        )

    params = dict(conv1=layer(keys[:7]), conv2=layer(keys[7:14]))
    return params, in_cg   # in_cg == ffc_block.conv1.ffc.global_in_num


# ----------------------------------------------------------------------------
if __name__ == "__main__":
    dim, N, H, W = 32, 2, 16, 16   # out_cg//2 = 12 (divisible by 4 -> LFU valid)
    key = jax.random.PRNGKey(0)
    kx, km, kp = jax.random.split(key, 3)

    gen_ft = jax.random.normal(kx, (N, dim, H, W), jnp.float32)
    mask = jax.random.uniform(km, (N, 1, H, W), jnp.float32)
    params, global_in_num = init_params(kp, dim)

    fwd = jax.jit(functools.partial(ffc_block_forward,
                                    global_in_num=global_in_num))
    out = jax.block_until_ready(fwd(gen_ft, mask, params))

    assert out.shape == gen_ft.shape and out.dtype == jnp.float32
    assert bool(jnp.all(jnp.isfinite(out)))
    print("KERNEL_OK")
</pallas_src>

<mosaic_0001>
module attributes {stable_mosaic.version = 11 : i64} {
  func.func @_conv_kernel(%arg0: i32, %arg1: i32, %arg2: memref<12x24xbf16, #tpu.memory_space<vmem>>, %arg3: memref<1x24x256xbf16, #tpu.memory_space<vmem>>, %arg4: memref<1x12x256xf32, #tpu.memory_space<vmem>>) attributes {dimension_semantics = [#tpu.dimension_semantics<parallel>, #tpu.dimension_semantics<parallel>], iteration_bounds = array<i64: 2, 1>, scalar_prefetch = 0 : i64, scratch_operands = 0 : i64, tpu.core_type = #tpu.core_type<tc>, window_params = [{pipeline_mode = #tpu.pipeline_mode<synchronous>, transform_indices = @transform_0, window_bounds = array<i64: 12, 24>}, {transform_indices = @transform_1, window_bounds = array<i64: 1, 24, 256>}, {transform_indices = @transform_2, window_bounds = array<i64: 1, 12, 256>}]} {
    %c0 = arith.constant 0 : index
    %c0_0 = arith.constant 0 : index
    %0 = vector.load %arg2[%c0, %c0_0] : memref<12x24xbf16, #tpu.memory_space<vmem>>, vector<12x24xbf16>
    %c0_1 = arith.constant 0 : index
    %c0_2 = arith.constant 0 : index
    %c0_3 = arith.constant 0 : index
    %1 = vector.load %arg3[%c0_1, %c0_2, %c0_3] : memref<1x24x256xbf16, #tpu.memory_space<vmem>>, vector<1x24x256xbf16>
    %2 = vector.shape_cast %1 : vector<1x24x256xbf16> to vector<24x256xbf16>
    %cst = arith.constant dense<0.000000e+00> : vector<12x256xf32>
    %3 = tpu.matmul %0, %2, %cst {dimension_numbers = #tpu.dot_dimension_numbers<[1], [0], [0], [1], [0, 0, 1, 1], [], []>} : vector<12x24xbf16>, vector<24x256xbf16>, vector<12x256xf32> -> vector<12x256xf32>
    %cst_4 = arith.constant 0.000000e+00 : f32
    %4 = vector.broadcast %cst_4 : f32 to vector<12x256xf32>
    %5 = arith.maximumf %3, %4 : vector<12x256xf32>
    %c0_5 = arith.constant 0 : index
    %c0_6 = arith.constant 0 : index
    %c0_7 = arith.constant 0 : index
    %6 = vector.load %arg4[%c0_5, %c0_6, %c0_7] : memref<1x12x256xf32, #tpu.memory_space<vmem>>, vector<1x12x256xf32>
    %7 = vector.shape_cast %6 : vector<1x12x256xf32> to vector<12x256xf32>
    %8 = vector.shape_cast %5 : vector<12x256xf32> to vector<1x12x256xf32>
    tpu.vector_store %arg4[%c0_5, %c0_6, %c0_7], %8 {strides = array<i32>} : memref<1x12x256xf32, #tpu.memory_space<vmem>>, vector<1x12x256xf32>,
    return
  }
  func.func @transform_0(%arg0: i32, %arg1: i32) -> (i32, i32) {
    %c0_i32 = arith.constant 0 : i32
    %c0_i32_0 = arith.constant 0 : i32
    %c0_i32_1 = arith.constant 0 : i32
    return %c0_i32, %c0_i32_0 : i32, i32
  }
  func.func @transform_1(%arg0: i32, %arg1: i32) -> (i32, i32, i32) {
    %c0_i32 = arith.constant 0 : i32
    %c0_i32_0 = arith.constant 0 : i32
    return %arg0, %c0_i32, %arg1 : i32, i32, i32
  }
  func.func @transform_2(%arg0: i32, %arg1: i32) -> (i32, i32, i32) {
    %c0_i32 = arith.constant 0 : i32
    %c0_i32_0 = arith.constant 0 : i32
    return %arg0, %c0_i32, %arg1 : i32, i32, i32
  }
}

module attributes {stable_mosaic.version = 11 : i64} {
  func.func @_conv_kernel(%arg0: i32, %arg1: i32, %arg2: memref<24x24xbf16, #tpu.memory_space<vmem>>, %arg3: memref<1x24x144xbf16, #tpu.memory_space<vmem>>, %arg4: memref<1x24x144xf32, #tpu.memory_space<vmem>>) attributes {dimension_semantics = [#tpu.dimension_semantics<parallel>, #tpu.dimension_semantics<parallel>], iteration_bounds = array<i64: 2, 1>, scalar_prefetch = 0 : i64, scratch_operands = 0 : i64, tpu.core_type = #tpu.core_type<tc>, window_params = [{pipeline_mode = #tpu.pipeline_mode<synchronous>, transform_indices = @transform_0, window_bounds = array<i64: 24, 24>}, {transform_indices = @transform_1, window_bounds = array<i64: 1, 24, 144>}, {transform_indices = @transform_2, window_bounds = array<i64: 1, 24, 144>}]} {
    %c0 = arith.constant 0 : index
    %c0_0 = arith.constant 0 : index
    %0 = vector.load %arg2[%c0, %c0_0] : memref<24x24xbf16, #tpu.memory_space<vmem>>, vector<24x24xbf16>
    %c0_1 = arith.constant 0 : index
    %c0_2 = arith.constant 0 : index
    %c0_3 = arith.constant 0 : index
    %1 = vector.load %arg3[%c0_1, %c0_2, %c0_3] : memref<1x24x144xbf16, #tpu.memory_space<vmem>>, vector<1x24x144xbf16>
    %2 = vector.shape_cast %1 : vector<1x24x144xbf16> to vector<24x144xbf16>
    %cst = arith.constant dense<0.000000e+00> : vector<24x144xf32>
    %3 = tpu.matmul %0, %2, %cst {dimension_numbers = #tpu.dot_dimension_numbers<[1], [0], [0], [1], [0, 0, 1, 1], [], []>} : vector<24x24xbf16>, vector<24x144xbf16>, vector<24x144xf32> -> vector<24x144xf32>
    %cst_4 = arith.constant 0.000000e+00 : f32
    %4 = vector.broadcast %cst_4 : f32 to vector<24x144xf32>
    %5 = arith.maximumf %3, %4 : vector<24x144xf32>
    %c0_5 = arith.constant 0 : index
    %c0_6 = arith.constant 0 : index
    %c0_7 = arith.constant 0 : index
    %6 = vector.load %arg4[%c0_5, %c0_6, %c0_7] : memref<1x24x144xf32, #tpu.memory_space<vmem>>, vector<1x24x144xf32>
    %7 = vector.shape_cast %6 : vector<1x24x144xf32> to vector<24x144xf32>
    %8 = vector.shape_cast %5 : vector<24x144xf32> to vector<1x24x144xf32>
    tpu.vector_store %arg4[%c0_5, %c0_6, %c0_7], %8 {strides = array<i32>} : memref<1x24x144xf32, #tpu.memory_space<vmem>>, vector<1x24x144xf32>,
    return
  }
  func.func @transform_0(%arg0: i32, %arg1: i32) -> (i32, i32) {
    %c0_i32 = arith.constant 0 : i32
    %c0_i32_0 = arith.constant 0 : i32
    %c0_i32_1 = arith.constant 0 : i32
    return %c0_i32, %c0_i32_0 : i32, i32
  }
  func.func @transform_1(%arg0: i32, %arg1: i32) -> (i32, i32, i32) {
    %c0_i32 = arith.constant 0 : i32
    %c0_i32_0 = arith.constant 0 : i32
    return %arg0, %c0_i32, %arg1 : i32, i32, i32
  }
  func.func @transform_2(%arg0: i32, %arg1: i32) -> (i32, i32, i32) {
    %c0_i32 = arith.constant 0 : i32
    %c0_i32_0 = arith.constant 0 : i32
    return %arg0, %c0_i32, %arg1 : i32, i32, i32
  }
}

module attributes {stable_mosaic.version = 11 : i64} {
  func.func @_conv_kernel(%arg0: i32, %arg1: i32, %arg2: memref<24x24xbf16, #tpu.memory_space<vmem>>, %arg3: memref<1x24x40xbf16, #tpu.memory_space<vmem>>, %arg4: memref<1x24x40xf32, #tpu.memory_space<vmem>>) attributes {dimension_semantics = [#tpu.dimension_semantics<parallel>, #tpu.dimension_semantics<parallel>], iteration_bounds = array<i64: 2, 1>, scalar_prefetch = 0 : i64, scratch_operands = 0 : i64, tpu.core_type = #tpu.core_type<tc>, window_params = [{pipeline_mode = #tpu.pipeline_mode<synchronous>, transform_indices = @transform_0, window_bounds = array<i64: 24, 24>}, {transform_indices = @transform_1, window_bounds = array<i64: 1, 24, 40>}, {transform_indices = @transform_2, window_bounds = array<i64: 1, 24, 40>}]} {
    %c0 = arith.constant 0 : index
    %c0_0 = arith.constant 0 : index
    %0 = vector.load %arg2[%c0, %c0_0] : memref<24x24xbf16, #tpu.memory_space<vmem>>, vector<24x24xbf16>
    %c0_1 = arith.constant 0 : index
    %c0_2 = arith.constant 0 : index
    %c0_3 = arith.constant 0 : index
    %1 = vector.load %arg3[%c0_1, %c0_2, %c0_3] : memref<1x24x40xbf16, #tpu.memory_space<vmem>>, vector<1x24x40xbf16>
    %2 = vector.shape_cast %1 : vector<1x24x40xbf16> to vector<24x40xbf16>
    %cst = arith.constant dense<0.000000e+00> : vector<24x40xf32>
    %3 = tpu.matmul %0, %2, %cst {dimension_numbers = #tpu.dot_dimension_numbers<[1], [0], [0], [1], [0, 0, 1, 1], [], []>} : vector<24x24xbf16>, vector<24x40xbf16>, vector<24x40xf32> -> vector<24x40xf32>
    %cst_4 = arith.constant 0.000000e+00 : f32
    %4 = vector.broadcast %cst_4 : f32 to vector<24x40xf32>
    %5 = arith.maximumf %3, %4 : vector<24x40xf32>
    %c0_5 = arith.constant 0 : index
    %c0_6 = arith.constant 0 : index
    %c0_7 = arith.constant 0 : index
    %6 = vector.load %arg4[%c0_5, %c0_6, %c0_7] : memref<1x24x40xf32, #tpu.memory_space<vmem>>, vector<1x24x40xf32>
    %7 = vector.shape_cast %6 : vector<1x24x40xf32> to vector<24x40xf32>
    %8 = vector.shape_cast %5 : vector<24x40xf32> to vector<1x24x40xf32>
    tpu.vector_store %arg4[%c0_5, %c0_6, %c0_7], %8 {strides = array<i32>} : memref<1x24x40xf32, #tpu.memory_space<vmem>>, vector<1x24x40xf32>,
    return
  }
  func.func @transform_0(%arg0: i32, %arg1: i32) -> (i32, i32) {
    %c0_i32 = arith.constant 0 : i32
    %c0_i32_0 = arith.constant 0 : i32
    %c0_i32_1 = arith.constant 0 : i32
    return %c0_i32, %c0_i32_0 : i32, i32
  }
  func.func @transform_1(%arg0: i32, %arg1: i32) -> (i32, i32, i32) {
    %c0_i32 = arith.constant 0 : i32
    %c0_i32_0 = arith.constant 0 : i32
    return %arg0, %c0_i32, %arg1 : i32, i32, i32
  }
  func.func @transform_2(%arg0: i32, %arg1: i32) -> (i32, i32, i32) {
    %c0_i32 = arith.constant 0 : i32
    %c0_i32_0 = arith.constant 0 : i32
    return %arg0, %c0_i32, %arg1 : i32, i32, i32
  }
}

module attributes {stable_mosaic.version = 11 : i64} {
  func.func @_conv_kernel(%arg0: i32, %arg1: i32, %arg2: memref<32x72xbf16, #tpu.memory_space<vmem>>, %arg3: memref<1x72x256xbf16, #tpu.memory_space<vmem>>, %arg4: memref<1x32x256xf32, #tpu.memory_space<vmem>>) attributes {dimension_semantics = [#tpu.dimension_semantics<parallel>, #tpu.dimension_semantics<parallel>], iteration_bounds = array<i64: 2, 1>, scalar_prefetch = 0 : i64, scratch_operands = 0 : i64, tpu.core_type = #tpu.core_type<tc>, window_params = [{pipeline_mode = #tpu.pipeline_mode<synchronous>, transform_indices = @transform_0, window_bounds = array<i64: 32, 72>}, {transform_indices = @transform_1, window_bounds = array<i64: 1, 72, 256>}, {transform_indices = @transform_2, window_bounds = array<i64: 1, 32, 256>}]} {
    %c0 = arith.constant 0 : index
    %c0_0 = arith.constant 0 : index
    %0 = vector.load %arg2[%c0, %c0_0] : memref<32x72xbf16, #tpu.memory_space<vmem>>, vector<32x72xbf16>
    %c0_1 = arith.constant 0 : index
    %c0_2 = arith.constant 0 : index
    %c0_3 = arith.constant 0 : index
    %1 = vector.load %arg3[%c0_1, %c0_2, %c0_3] : memref<1x72x256xbf16, #tpu.memory_space<vmem>>, vector<1x72x256xbf16>
    %2 = vector.shape_cast %1 : vector<1x72x256xbf16> to vector<72x256xbf16>
    %cst = arith.constant dense<0.000000e+00> : vector<32x256xf32>
    %3 = tpu.matmul %0, %2, %cst {dimension_numbers = #tpu.dot_dimension_numbers<[1], [0], [0], [1], [0, 0, 1, 1], [], []>} : vector<32x72xbf16>, vector<72x256xbf16>, vector<32x256xf32> -> vector<32x256xf32>
    %c0_4 = arith.constant 0 : index
    %c0_5 = arith.constant 0 : index
    %c0_6 = arith.constant 0 : index
    %4 = vector.load %arg4[%c0_4, %c0_5, %c0_6] : memref<1x32x256xf32, #tpu.memory_space<vmem>>, vector<1x32x256xf32>
    %5 = vector.shape_cast %4 : vector<1x32x256xf32> to vector<32x256xf32>
    %6 = vector.shape_cast %3 : vector<32x256xf32> to vector<1x32x256xf32>
    tpu.vector_store %arg4[%c0_4, %c0_5, %c0_6], %6 {strides = array<i32>} : memref<1x32x256xf32, #tpu.memory_space<vmem>>, vector<1x32x256xf32>,
    return
  }
  func.func @transform_0(%arg0: i32, %arg1: i32) -> (i32, i32) {
    %c0_i32 = arith.constant 0 : i32
    %c0_i32_0 = arith.constant 0 : i32
    %c0_i32_1 = arith.constant 0 : i32
    return %c0_i32, %c0_i32_0 : i32, i32
  }
  func.func @transform_1(%arg0: i32, %arg1: i32) -> (i32, i32, i32) {
    %c0_i32 = arith.constant 0 : i32
    %c0_i32_0 = arith.constant 0 : i32
    return %arg0, %c0_i32, %arg1 : i32, i32, i32
  }
  func.func @transform_2(%arg0: i32, %arg1: i32) -> (i32, i32, i32) {
    %c0_i32 = arith.constant 0 : i32
    %c0_i32_0 = arith.constant 0 : i32
    return %arg0, %c0_i32, %arg1 : i32, i32, i32
  }
}

module attributes {stable_mosaic.version = 11 : i64} {
  func.func @_conv_kernel(%arg0: i32, %arg1: i32, %arg2: memref<24x12xbf16, #tpu.memory_space<vmem>>, %arg3: memref<1x12x256xbf16, #tpu.memory_space<vmem>>, %arg4: memref<1x24x256xf32, #tpu.memory_space<vmem>>, %arg5: memref<1x24x256xf32, #tpu.memory_space<vmem>>) attributes {dimension_semantics = [#tpu.dimension_semantics<parallel>, #tpu.dimension_semantics<parallel>], iteration_bounds = array<i64: 2, 1>, scalar_prefetch = 0 : i64, scratch_operands = 0 : i64, tpu.core_type = #tpu.core_type<tc>, window_params = [{pipeline_mode = #tpu.pipeline_mode<synchronous>, transform_indices = @transform_0, window_bounds = array<i64: 24, 12>}, {transform_indices = @transform_1, window_bounds = array<i64: 1, 12, 256>}, {transform_indices = @transform_2, window_bounds = array<i64: 1, 24, 256>}, {transform_indices = @transform_3, window_bounds = array<i64: 1, 24, 256>}]} {
    %c0 = arith.constant 0 : index
    %c0_0 = arith.constant 0 : index
    %0 = vector.load %arg2[%c0, %c0_0] : memref<24x12xbf16, #tpu.memory_space<vmem>>, vector<24x12xbf16>
    %c0_1 = arith.constant 0 : index
    %c0_2 = arith.constant 0 : index
    %c0_3 = arith.constant 0 : index
    %1 = vector.load %arg3[%c0_1, %c0_2, %c0_3] : memref<1x12x256xbf16, #tpu.memory_space<vmem>>, vector<1x12x256xbf16>
    %2 = vector.shape_cast %1 : vector<1x12x256xbf16> to vector<12x256xbf16>
    %cst = arith.constant dense<0.000000e+00> : vector<24x256xf32>
    %3 = tpu.matmul %0, %2, %cst {dimension_numbers = #tpu.dot_dimension_numbers<[1], [0], [0], [1], [0, 0, 1, 1], [], []>} : vector<24x12xbf16>, vector<12x256xbf16>, vector<24x256xf32> -> vector<24x256xf32>
    %c0_4 = arith.constant 0 : index
    %c0_5 = arith.constant 0 : index
    %c0_6 = arith.constant 0 : index
    %4 = vector.load %arg4[%c0_4, %c0_5, %c0_6] : memref<1x24x256xf32, #tpu.memory_space<vmem>>, vector<1x24x256xf32>
    %5 = vector.shape_cast %4 : vector<1x24x256xf32> to vector<24x256xf32>
    %6 = arith.addf %3, %5 : vector<24x256xf32>
    %c0_7 = arith.constant 0 : index
    %c0_8 = arith.constant 0 : index
    %c0_9 = arith.constant 0 : index
    %7 = vector.load %arg5[%c0_7, %c0_8, %c0_9] : memref<1x24x256xf32, #tpu.memory_space<vmem>>, vector<1x24x256xf32>
    %8 = vector.shape_cast %7 : vector<1x24x256xf32> to vector<24x256xf32>
    %9 = vector.shape_cast %6 : vector<24x256xf32> to vector<1x24x256xf32>
    tpu.vector_store %arg5[%c0_7, %c0_8, %c0_9], %9 {strides = array<i32>} : memref<1x24x256xf32, #tpu.memory_space<vmem>>, vector<1x24x256xf32>,
    return
  }
  func.func @transform_0(%arg0: i32, %arg1: i32) -> (i32, i32) {
    %c0_i32 = arith.constant 0 : i32
    %c0_i32_0 = arith.constant 0 : i32
    %c0_i32_1 = arith.constant 0 : i32
    return %c0_i32, %c0_i32_0 : i32, i32
  }
  func.func @transform_1(%arg0: i32, %arg1: i32) -> (i32, i32, i32) {
    %c0_i32 = arith.constant 0 : i32
    %c0_i32_0 = arith.constant 0 : i32
    return %arg0, %c0_i32, %arg1 : i32, i32, i32
  }
  func.func @transform_2(%arg0: i32, %arg1: i32) -> (i32, i32, i32) {
    %c0_i32 = arith.constant 0 : i32
    %c0_i32_0 = arith.constant 0 : i32
    return %arg0, %c0_i32, %arg1 : i32, i32, i32
  }
  func.func @transform_3(%arg0: i32, %arg1: i32) -> (i32, i32, i32) {
    %c0_i32 = arith.constant 0 : i32
    %c0_i32_0 = arith.constant 0 : i32
    return %arg0, %c0_i32, %arg1 : i32, i32, i32
  }
}

module attributes {stable_mosaic.version = 11 : i64} {
  func.func @_conv_kernel(%arg0: i32, %arg1: i32, %arg2: memref<8x216xbf16, #tpu.memory_space<vmem>>, %arg3: memref<1x216x256xbf16, #tpu.memory_space<vmem>>, %arg4: memref<1x8x256xf32, #tpu.memory_space<vmem>>, %arg5: memref<1x8x256xf32, #tpu.memory_space<vmem>>) attributes {dimension_semantics = [#tpu.dimension_semantics<parallel>, #tpu.dimension_semantics<parallel>], iteration_bounds = array<i64: 2, 1>, scalar_prefetch = 0 : i64, scratch_operands = 0 : i64, tpu.core_type = #tpu.core_type<tc>, window_params = [{pipeline_mode = #tpu.pipeline_mode<synchronous>, transform_indices = @transform_0, window_bounds = array<i64: 8, 216>}, {transform_indices = @transform_1, window_bounds = array<i64: 1, 216, 256>}, {transform_indices = @transform_2, window_bounds = array<i64: 1, 8, 256>}, {transform_indices = @transform_3, window_bounds = array<i64: 1, 8, 256>}]} {
    %c0 = arith.constant 0 : index
    %c0_0 = arith.constant 0 : index
    %0 = vector.load %arg2[%c0, %c0_0] : memref<8x216xbf16, #tpu.memory_space<vmem>>, vector<8x216xbf16>
    %c0_1 = arith.constant 0 : index
    %c0_2 = arith.constant 0 : index
    %c0_3 = arith.constant 0 : index
    %1 = vector.load %arg3[%c0_1, %c0_2, %c0_3] : memref<1x216x256xbf16, #tpu.memory_space<vmem>>, vector<1x216x256xbf16>
    %2 = vector.shape_cast %1 : vector<1x216x256xbf16> to vector<216x256xbf16>
    %cst = arith.constant dense<0.000000e+00> : vector<8x256xf32>
    %3 = tpu.matmul %0, %2, %cst {dimension_numbers = #tpu.dot_dimension_numbers<[1], [0], [0], [1], [0, 0, 1, 1], [], []>} : vector<8x216xbf16>, vector<216x256xbf16>, vector<8x256xf32> -> vector<8x256xf32>
    %c0_4 = arith.constant 0 : index
    %c0_5 = arith.constant 0 : index
    %c0_6 = arith.constant 0 : index
    %4 = vector.load %arg4[%c0_4, %c0_5, %c0_6] : memref<1x8x256xf32, #tpu.memory_space<vmem>>, vector<1x8x256xf32>
    %5 = vector.shape_cast %4 : vector<1x8x256xf32> to vector<8x256xf32>
    %6 = arith.addf %3, %5 : vector<8x256xf32>
    %c0_7 = arith.constant 0 : index
    %c0_8 = arith.constant 0 : index
    %c0_9 = arith.constant 0 : index
    %7 = vector.load %arg5[%c0_7, %c0_8, %c0_9] : memref<1x8x256xf32, #tpu.memory_space<vmem>>, vector<1x8x256xf32>
    %8 = vector.shape_cast %7 : vector<1x8x256xf32> to vector<8x256xf32>
    %9 = vector.shape_cast %6 : vector<8x256xf32> to vector<1x8x256xf32>
    tpu.vector_store %arg5[%c0_7, %c0_8, %c0_9], %9 {strides = array<i32>} : memref<1x8x256xf32, #tpu.memory_space<vmem>>, vector<1x8x256xf32>,
    return
  }
  func.func @transform_0(%arg0: i32, %arg1: i32) -> (i32, i32) {
    %c0_i32 = arith.constant 0 : i32
    %c0_i32_0 = arith.constant 0 : i32
    %c0_i32_1 = arith.constant 0 : i32
    return %c0_i32, %c0_i32_0 : i32, i32
  }
  func.func @transform_1(%arg0: i32, %arg1: i32) -> (i32, i32, i32) {
    %c0_i32 = arith.constant 0 : i32
    %c0_i32_0 = arith.constant 0 : i32
    return %arg0, %c0_i32, %arg1 : i32, i32, i32
  }
  func.func @transform_2(%arg0: i32, %arg1: i32) -> (i32, i32, i32) {
    %c0_i32 = arith.constant 0 : i32
    %c0_i32_0 = arith.constant 0 : i32
    return %arg0, %c0_i32, %arg1 : i32, i32, i32
  }
  func.func @transform_3(%arg0: i32, %arg1: i32) -> (i32, i32, i32) {
    %c0_i32 = arith.constant 0 : i32
    %c0_i32_0 = arith.constant 0 : i32
    return %arg0, %c0_i32, %arg1 : i32, i32, i32
  }
}

module attributes {stable_mosaic.version = 11 : i64} {
  func.func @_conv_kernel(%arg0: i32, %arg1: i32, %arg2: memref<24x12xbf16, #tpu.memory_space<vmem>>, %arg3: memref<1x12x256xbf16, #tpu.memory_space<vmem>>, %arg4: memref<1x24x256xf32, #tpu.memory_space<vmem>>, %arg5: memref<1x24x256xf32, #tpu.memory_space<vmem>>, %arg6: memref<1x24x256xf32, #tpu.memory_space<vmem>>) attributes {dimension_semantics = [#tpu.dimension_semantics<parallel>, #tpu.dimension_semantics<parallel>], iteration_bounds = array<i64: 2, 1>, scalar_prefetch = 0 : i64, scratch_operands = 0 : i64, tpu.core_type = #tpu.core_type<tc>, window_params = [{pipeline_mode = #tpu.pipeline_mode<synchronous>, transform_indices = @transform_0, window_bounds = array<i64: 24, 12>}, {transform_indices = @transform_1, window_bounds = array<i64: 1, 12, 256>}, {transform_indices = @transform_2, window_bounds = array<i64: 1, 24, 256>}, {transform_indices = @transform_3, window_bounds = array<i64: 1, 24, 256>}, {transform_indices = @transform_4, window_bounds = array<i64: 1, 24, 256>}]} {
    %c0 = arith.constant 0 : index
    %c0_0 = arith.constant 0 : index
    %0 = vector.load %arg2[%c0, %c0_0] : memref<24x12xbf16, #tpu.memory_space<vmem>>, vector<24x12xbf16>
    %c0_1 = arith.constant 0 : index
    %c0_2 = arith.constant 0 : index
    %c0_3 = arith.constant 0 : index
    %1 = vector.load %arg3[%c0_1, %c0_2, %c0_3] : memref<1x12x256xbf16, #tpu.memory_space<vmem>>, vector<1x12x256xbf16>
    %2 = vector.shape_cast %1 : vector<1x12x256xbf16> to vector<12x256xbf16>
    %cst = arith.constant dense<0.000000e+00> : vector<24x256xf32>
    %3 = tpu.matmul %0, %2, %cst {dimension_numbers = #tpu.dot_dimension_numbers<[1], [0], [0], [1], [0, 0, 1, 1], [], []>} : vector<24x12xbf16>, vector<12x256xbf16>, vector<24x256xf32> -> vector<24x256xf32>
    %c0_4 = arith.constant 0 : index
    %c0_5 = arith.constant 0 : index
    %c0_6 = arith.constant 0 : index
    %4 = vector.load %arg4[%c0_4, %c0_5, %c0_6] : memref<1x24x256xf32, #tpu.memory_space<vmem>>, vector<1x24x256xf32>
    %5 = vector.shape_cast %4 : vector<1x24x256xf32> to vector<24x256xf32>
    %6 = arith.addf %3, %5 : vector<24x256xf32>
    %c0_7 = arith.constant 0 : index
    %c0_8 = arith.constant 0 : index
    %c0_9 = arith.constant 0 : index
    %7 = vector.load %arg5[%c0_7, %c0_8, %c0_9] : memref<1x24x256xf32, #tpu.memory_space<vmem>>, vector<1x24x256xf32>
    %8 = vector.shape_cast %7 : vector<1x24x256xf32> to vector<24x256xf32>
    %cst_10 = arith.constant 3.000000e+00 : f32
    %9 = vector.broadcast %cst_10 : f32 to vector<24x256xf32>
    %10 = arith.mulf %9, %8 : vector<24x256xf32>
    %11 = arith.addf %6, %10 : vector<24x256xf32>
    %c0_11 = arith.constant 0 : index
    %c0_12 = arith.constant 0 : index
    %c0_13 = arith.constant 0 : index
    %12 = vector.load %arg6[%c0_11, %c0_12, %c0_13] : memref<1x24x256xf32, #tpu.memory_space<vmem>>, vector<1x24x256xf32>
    %13 = vector.shape_cast %12 : vector<1x24x256xf32> to vector<24x256xf32>
    %14 = vector.shape_cast %11 : vector<24x256xf32> to vector<1x24x256xf32>
    tpu.vector_store %arg6[%c0_11, %c0_12, %c0_13], %14 {strides = array<i32>} : memref<1x24x256xf32, #tpu.memory_space<vmem>>, vector<1x24x256xf32>,
    return
  }
  func.func @transform_0(%arg0: i32, %arg1: i32) -> (i32, i32) {
    %c0_i32 = arith.constant 0 : i32
    %c0_i32_0 = arith.constant 0 : i32
    %c0_i32_1 = arith.constant 0 : i32
    return %c0_i32, %c0_i32_0 : i32, i32
  }
  func.func @transform_1(%arg0: i32, %arg1: i32) -> (i32, i32, i32) {
    %c0_i32 = arith.constant 0 : i32
    %c0_i32_0 = arith.constant 0 : i32
    return %arg0, %c0_i32, %arg1 : i32, i32, i32
  }
  func.func @transform_2(%arg0: i32, %arg1: i32) -> (i32, i32, i32) {
    %c0_i32 = arith.constant 0 : i32
    %c0_i32_0 = arith.constant 0 : i32
    return %arg0, %c0_i32, %arg1 : i32, i32, i32
  }
  func.func @transform_3(%arg0: i32, %arg1: i32) -> (i32, i32, i32) {
    %c0_i32 = arith.constant 0 : i32
    %c0_i32_0 = arith.constant 0 : i32
    return %arg0, %c0_i32, %arg1 : i32, i32, i32
  }
  func.func @transform_4(%arg0: i32, %arg1: i32) -> (i32, i32, i32) {
    %c0_i32 = arith.constant 0 : i32
    %c0_i32_0 = arith.constant 0 : i32
    return %arg0, %c0_i32, %arg1 : i32, i32, i32
  }
}

module attributes {stable_mosaic.version = 11 : i64} {
  func.func @_conv_kernel(%arg0: i32, %arg1: i32, %arg2: memref<8x216xbf16, #tpu.memory_space<vmem>>, %arg3: memref<1x216x256xbf16, #tpu.memory_space<vmem>>, %arg4: memref<1x8x256xf32, #tpu.memory_space<vmem>>, %arg5: memref<1x8x256xf32, #tpu.memory_space<vmem>>, %arg6: memref<1x8x256xf32, #tpu.memory_space<vmem>>) attributes {dimension_semantics = [#tpu.dimension_semantics<parallel>, #tpu.dimension_semantics<parallel>], iteration_bounds = array<i64: 2, 1>, scalar_prefetch = 0 : i64, scratch_operands = 0 : i64, tpu.core_type = #tpu.core_type<tc>, window_params = [{pipeline_mode = #tpu.pipeline_mode<synchronous>, transform_indices = @transform_0, window_bounds = array<i64: 8, 216>}, {transform_indices = @transform_1, window_bounds = array<i64: 1, 216, 256>}, {transform_indices = @transform_2, window_bounds = array<i64: 1, 8, 256>}, {transform_indices = @transform_3, window_bounds = array<i64: 1, 8, 256>}, {transform_indices = @transform_4, window_bounds = array<i64: 1, 8, 256>}]} {
    %c0 = arith.constant 0 : index
    %c0_0 = arith.constant 0 : index
    %0 = vector.load %arg2[%c0, %c0_0] : memref<8x216xbf16, #tpu.memory_space<vmem>>, vector<8x216xbf16>
    %c0_1 = arith.constant 0 : index
    %c0_2 = arith.constant 0 : index
    %c0_3 = arith.constant 0 : index
    %1 = vector.load %arg3[%c0_1, %c0_2, %c0_3] : memref<1x216x256xbf16, #tpu.memory_space<vmem>>, vector<1x216x256xbf16>
    %2 = vector.shape_cast %1 : vector<1x216x256xbf16> to vector<216x256xbf16>
    %cst = arith.constant dense<0.000000e+00> : vector<8x256xf32>
    %3 = tpu.matmul %0, %2, %cst {dimension_numbers = #tpu.dot_dimension_numbers<[1], [0], [0], [1], [0, 0, 1, 1], [], []>} : vector<8x216xbf16>, vector<216x256xbf16>, vector<8x256xf32> -> vector<8x256xf32>
    %c0_4 = arith.constant 0 : index
    %c0_5 = arith.constant 0 : index
    %c0_6 = arith.constant 0 : index
    %4 = vector.load %arg4[%c0_4, %c0_5, %c0_6] : memref<1x8x256xf32, #tpu.memory_space<vmem>>, vector<1x8x256xf32>
    %5 = vector.shape_cast %4 : vector<1x8x256xf32> to vector<8x256xf32>
    %6 = arith.addf %3, %5 : vector<8x256xf32>
    %c0_7 = arith.constant 0 : index
    %c0_8 = arith.constant 0 : index
    %c0_9 = arith.constant 0 : index
    %7 = vector.load %arg5[%c0_7, %c0_8, %c0_9] : memref<1x8x256xf32, #tpu.memory_space<vmem>>, vector<1x8x256xf32>
    %8 = vector.shape_cast %7 : vector<1x8x256xf32> to vector<8x256xf32>
    %cst_10 = arith.constant 3.000000e+00 : f32
    %9 = vector.broadcast %cst_10 : f32 to vector<8x256xf32>
    %10 = arith.mulf %9, %8 : vector<8x256xf32>
    %11 = arith.addf %6, %10 : vector<8x256xf32>
    %c0_11 = arith.constant 0 : index
    %c0_12 = arith.constant 0 : index
    %c0_13 = arith.constant 0 : index
    %12 = vector.load %arg6[%c0_11, %c0_12, %c0_13] : memref<1x8x256xf32, #tpu.memory_space<vmem>>, vector<1x8x256xf32>
    %13 = vector.shape_cast %12 : vector<1x8x256xf32> to vector<8x256xf32>
    %14 = vector.shape_cast %11 : vector<8x256xf32> to vector<1x8x256xf32>
    tpu.vector_store %arg6[%c0_11, %c0_12, %c0_13], %14 {strides = array<i32>} : memref<1x8x256xf32, #tpu.memory_space<vmem>>, vector<1x8x256xf32>,
    return
  }
  func.func @transform_0(%arg0: i32, %arg1: i32) -> (i32, i32) {
    %c0_i32 = arith.constant 0 : i32
    %c0_i32_0 = arith.constant 0 : i32
    %c0_i32_1 = arith.constant 0 : i32
    return %c0_i32, %c0_i32_0 : i32, i32
  }
  func.func @transform_1(%arg0: i32, %arg1: i32) -> (i32, i32, i32) {
    %c0_i32 = arith.constant 0 : i32
    %c0_i32_0 = arith.constant 0 : i32
    return %arg0, %c0_i32, %arg1 : i32, i32, i32
  }
  func.func @transform_2(%arg0: i32, %arg1: i32) -> (i32, i32, i32) {
    %c0_i32 = arith.constant 0 : i32
    %c0_i32_0 = arith.constant 0 : i32
    return %arg0, %c0_i32, %arg1 : i32, i32, i32
  }
  func.func @transform_3(%arg0: i32, %arg1: i32) -> (i32, i32, i32) {
    %c0_i32 = arith.constant 0 : i32
    %c0_i32_0 = arith.constant 0 : i32
    return %arg0, %c0_i32, %arg1 : i32, i32, i32
  }
  func.func @transform_4(%arg0: i32, %arg1: i32) -> (i32, i32, i32) {
    %c0_i32 = arith.constant 0 : i32
    %c0_i32_0 = arith.constant 0 : i32
    return %arg0, %c0_i32, %arg1 : i32, i32, i32
  }
}

</mosaic_0001>

<bundles_post_ra>
// kernel: ffc_block_forward.12
= control target key start
LH: loop header
LB: loop body
LE: loop exit
PB: predicated region body
PF: predicated region fallthrough
CT: control target
= control target key end

     0   :  { %s448_s9 = smov 0   ;;  %s450_s10 = smov 0   ;;  %s484_s0 = inlined_call_operand.vmem [shape: bf16[12,24], index: 0, kind: input, shape index: {}]   ;;  %s485_s1 = inlined_call_operand.vmem [shape: bf16[2,24,256], index: 1, kind: input, shape index: {}]   ;;  %s486_s2 = inlined_call_operand.vmem [shape: f32[2,12,256], index: 2, kind: output, shape index: {}]  }
   0x1   :  { %s452_s11 = smov 0  }
   0x2 LB: > { %s24_s12 = sadd.s32 1, %s426_s10  ;;  %p362_p0 = scmp.ge.s32.totalorder %s430_s11, 1  ;;  %s430_s11 = sphi %s452_s11, %s12_s11   ;;  %s426_s10 = sphi %s450_s10, %s488_s10   ;;  %s422_s9 = sphi %s448_s9, %s487_s9  }
   0x3   : > { %p26_p1 = scmp.ge.s32.totalorder %s24_s12, 2  ;;  %p133_p2 = scmp.lt.s32.totalorder %s430_s11, 3 }
   0x5   : > { %s490_s12 = smov (%p26_p1, %s24_s12), 0  ;;  %p134_p3 = pnand %p362_p0, %p133_p2 }
   0x6   : > { %p164_p4 = scmp.lt.s32.totalorder (!%p134_p3), %s422_s9, 1  ;;  %v432_v0 = vmov (!%p134_p3), 0   ;;  %vm213_vm0 = vcmask (!%p134_p3), 1043456   ;;  %v407_v7 = vld [vmem:[%s484_s0] sm:$0x3f] (!%p134_p3)   ;;  %vm209_vm1 = vcmask (!%p134_p3), 195584  }
   0x7   : > { %137 = sbr.rel (%p134_p3) target bundleno = 245 (0xf5), region = 28  ;;  %252 = vmatprep.mubr.bf16.mxu0 (!%p134_p3), %v432_v0 }
   0xe   : > { %s492_s9 = smov (!%p164_p4, %s422_s9), 1 }
   0xf   : > { %s376_s13 = smul.u32 24, %s492_s9  ;;  %s375_s19 = sshll.u32 %s492_s9, 5 }
  0x10   : > { %s181_s22 = scalar_lea.vmem %s486_s2, %s375_s19 }
  0x11   : > { %s171_s16 = scalar_lea.vmem %s485_s1, %s376_s13 }
  0x12   : > { %v188_v1 = vld [vmem:[%s171_s16 + $0x10] sm:$0xff]  ;;  %v402_v2 = vld [vmem:[%s171_s16 + $0x4] ss:$8 sps:$4 sm:$0xff]   ;;  %v405_v4 = vld [vmem:[%s171_s16] ss:$8 sps:$4 sm:$0xff]  }
  0x13   : > { %v370_v3 = vcombine.high %v188_v1, %v188_v1  ;;  %v369_v5 = vcombine.low %v188_v1, %v188_v1  ;;  %220 = vmatprep.subr.bf16.mxu0 %v402_v2 }
  0x14   : > { %221 = vmatpush1.bf16.msra.mxu0 %v405_v4 }
  0x15   : > { %371 = vmatprep.subr.msk.bf16.mxu0 %vm213_vm0, %v370_v3  ;;  %v215_v6 = vsel %vm213_vm0, %v369_v5, 0 }
  0x18   : > { %223 = vmatpush1.bf16.msra.mxu0 %v215_v6 }
  0x1b   : > { %372 = vmatmul.mubr.msk.bf16.vlgmr.msra.gmra.mrb[0].mxu0 %vm209_vm1, %v407_v7 }
  0xee   : > { %v254_v8 = vpop.f32.mrb[0].mxu0 }
  0xef   : > { %v263_v9 = vmax.f32 %v254_v8, 0.0  ;;  %v256_v10 = vpop.f32.mrb[1].mxu0 }
  0xf0   : > { %v264_v11 = vmax.f32 %v256_v10, 0.0  ;;  %v258_v12 = vpop.f32.mrb[2].mxu0 }
  0xf1   : > { %267 = vst [vmem:[%s181_s22] sm:$0xff] %v263_v9  ;;  %v265_v13 = vmax.f32 %v258_v12, 0.0  ;;  %v260_v14 = vpop.f32.mrb[3].mxu0 }
  0xf2   : > { %268 = vst [vmem:[%s181_s22 + $0x8] sm:$0xff] %v264_v11  ;;  %v266_v15 = vmax.f32 %v260_v14, 0.0 }
  0xf3   : > { %269 = vst [vmem:[%s181_s22 + $0x10] sm:$0xf] %v265_v13 }
  0xf4   : > { %270 = vst [vmem:[%s181_s22 + $0x18] sm:$0xf] %v266_v15 }
  0xf5 PF: > { %s12_s11 = sadd.s32 1, %s430_s11   ;;  %s487_s9 = smov %s426_s10 }
  0xf6   : > { %p9_p5 = scmp.ge.s32.totalorder %s12_s11, 4   ;;  %s488_s10 = smov %s490_s12 }
  0xf8   :  { %11 = sbr.rel (!%p9_p5) target bundleno = 2 (0x2), region = 58 }

// kernel: ffc_block_forward.13
= control target key start
LH: loop header
LB: loop body
LE: loop exit
PB: predicated region body
PF: predicated region fallthrough
CT: control target
= control target key end

     0   :  { %s474_s9 = smov 0   ;;  %s476_s10 = smov 0   ;;  %s513_s0 = inlined_call_operand.vmem [shape: bf16[24,24], index: 0, kind: input, shape index: {}]   ;;  %s514_s1 = inlined_call_operand.vmem [shape: bf16[2,24,144], index: 1, kind: input, shape index: {}]   ;;  %s515_s2 = inlined_call_operand.vmem [shape: f32[2,24,144], index: 2, kind: output, shape index: {}]  }
   0x1   :  { %s478_s11 = smov 0  }
   0x2 LB: > { %s24_s12 = sadd.s32 1, %s452_s10  ;;  %p382_p0 = scmp.ge.s32.totalorder %s456_s11, 1  ;;  %s456_s11 = sphi %s478_s11, %s12_s11   ;;  %s452_s10 = sphi %s476_s10, %s517_s10   ;;  %s448_s9 = sphi %s474_s9, %s516_s9  }
   0x3   : > { %p26_p1 = scmp.ge.s32.totalorder %s24_s12, 2  ;;  %p133_p2 = scmp.lt.s32.totalorder %s456_s11, 3 }
   0x5   : > { %s519_s12 = smov (%p26_p1, %s24_s12), 0  ;;  %p134_p3 = pnand %p382_p0, %p133_p2 }
   0x6   : > { %p164_p4 = scmp.lt.s32.totalorder (!%p134_p3), %s448_s9, 1  ;;  %v458_v0 = vmov (!%p134_p3), 0   ;;  %vm220_vm0 = vcmask (!%p134_p3), 1043456   ;;  %v432_v7 = vld [vmem:[%s513_s0] sm:$0xff] (!%p134_p3)   ;;  %v433_v8 = vld [vmem:[%s513_s0 + $0x8] ss:$0 sps:$4 sm:$0xff] (!%p134_p3)  }
   0x7   : > { %137 = sbr.rel (%p134_p3) target bundleno = 245 (0xf5), region = 28  ;;  %259 = vmatprep.mubr.bf16.mxu0 (!%p134_p3), %v458_v0  ;;  %269 = vmatprep.mubr.bf16.mxu1 (!%p134_p3), %v458_v0  ;;  %vm213_vm1 = vcmask (!%p134_p3), 195584   ;;  %vm285_vm2 = vcmask (!%p134_p3), 130048  }
   0xe   : > { %s521_s9 = smov (!%p164_p4, %s448_s9), 1 }
   0xf   : > { %s400_s13 = smul.u32 24, %s521_s9 }
  0x10   : > { %s401_s21 = smul.u32 48, %s521_s9 }
  0x11   : > { %s171_s16 = scalar_lea.vmem %s514_s1, %s400_s13 }
  0x12   : > { %v189_v1 = vld [vmem:[%s171_s16 + $0x10] sm:$0xff]  ;;  %v427_v2 = vld [vmem:[%s171_s16 + $0x4] ss:$8 sps:$4 sm:$0xff]   ;;  %v429_v3 = vld [vmem:[%s171_s16] ss:$8 sps:$4 sm:$0xff]   ;;  %s181_s24 = scalar_lea.vmem %s515_s2, %s401_s21 }
  0x13   : > { %v390_v4 = vcombine.high %v189_v1, %v189_v1  ;;  %v389_v5 = vcombine.low %v189_v1, %v189_v1  ;;  %227 = vmatprep.subr.bf16.mxu0 %v427_v2  ;;  %396 = vmatprep.subr.bf16.mxu1 %v427_v2 }
  0x14   : > { %228 = vmatpush1.bf16.msra.mxu0 %v429_v3  ;;  %398 = vmatpush1.bf16.msra.mxu1 %v429_v3 }
  0x15   : > { %391 = vmatprep.subr.msk.bf16.mxu0 %vm220_vm0, %v390_v4  ;;  %397 = vmatprep.subr.msk.bf16.mxu1 %vm220_vm0, %v390_v4  ;;  %v222_v6 = vsel %vm220_vm0, %v389_v5, 0 }
  0x18   : > { %230 = vmatpush1.bf16.msra.mxu0 %v222_v6  ;;  %399 = vmatpush1.bf16.msra.mxu1 %v222_v6 }
  0x1b   : > { %392 = vmatmul.mubr.msk.bf16.vlgmr.msra.gmra.mrb[0].mxu0 %vm213_vm1, %v432_v7  ;;  %393 = vmatmul.mubr.msk.bf16.vlgmr.msra.gmra.mrb[0].mxu1 %vm213_vm1, %v433_v8 }
  0xee   : > { %v261_v9 = vpop.f32.mrb[0].mxu0  ;;  %v271_v10 = vpop.f32.mrb[0].mxu1 }
  0xef   : > { %v278_v11 = vmax.f32 %v261_v9, 0.0  ;;  %v282_v12 = vmax.f32 %v271_v10, 0.0  ;;  %v263_v13 = vpop.f32.mrb[1].mxu0  ;;  %v273_v14 = vpop.f32.mrb[1].mxu1 }
  0xf0   : > { %v279_v15 = vmax.f32 %v263_v13, 0.0  ;;  %v283_v16 = vmax.f32 %v273_v14, 0.0  ;;  %v265_v17 = vpop.f32.mrb[2].mxu0  ;;  %v275_v18 = vpop.f32.mrb[2].mxu1 }
  0xf1   : > { %284 = vst [vmem:[%s181_s24] sm:$0xff] %v278_v11  ;;  %289 = vst [vmem:[%s181_s24 + $0x20] sm:$0xff] %v282_v12  ;;  %v280_v19 = vmax.f32 %v265_v17, 0.0  ;;  %v267_v20 = vpop.f32.mrb[3].mxu0  ;;  %v276_v21 = vpop.f32.mrb[3].mxu1 }
  0xf2   : > { %286 = vst.msk [vmem:[%s181_s24 + $0x8] sm:$0xff] %vm285_vm2, %v279_v15  ;;  %290 = vst.msk [vmem:[%s181_s24 + $0x28] sm:$0xff] %vm285_vm2, %v283_v16  ;;  %v281_v22 = vmax.f32 %v267_v20, 0.0 }
  0xf3   : > { %287 = vst [vmem:[%s181_s24 + $0x10] sm:$0xff] %v280_v19 }
  0xf4   : > { %288 = vst.msk [vmem:[%s181_s24 + $0x18] sm:$0xff] %vm285_vm2, %v281_v22 }
  0xf5 PF: > { %s12_s11 = sadd.s32 1, %s456_s11   ;;  %s516_s9 = smov %s452_s10 }
  0xf6   : > { %p9_p5 = scmp.ge.s32.totalorder %s12_s11, 4   ;;  %s517_s10 = smov %s519_s12 }
  0xf8   :  { %11 = sbr.rel (!%p9_p5) target bundleno = 2 (0x2), region = 58 }

// kernel: reverse.8
= control target key start
LH: loop header
LB: loop body
LE: loop exit
PB: predicated region body
PF: predicated region fallthrough
CT: control target
= control target key end

     0   :  { %s344_s0 = inlined_call_operand.vmem [shape: f32[2,12,16,7], index: 0, kind: input, shape index: {}]   ;;  %s345_s1 = inlined_call_operand.vmem [shape: f32[2,12,16,7], index: 1, kind: output, shape index: {}]  }
   0x1   :  { %v112_v0 = vld [vmem:[%s344_s0 + $0x60] sm:$0xff]  ;;  %v113_v1 = vld [vmem:[%s344_s0 + $0xd0] sm:$0xff]  ;;  %v138_v14 = vld [vmem:[%s344_s0 + $0x68] sm:$0xff] }
   0x2   :  { %v115_v2 = vld [vmem:[%s344_s0 + $0x50] sm:$0xff]  ;;  %4 = vst [vmem:[%s345_s1] sm:$0xff] %v112_v0  ;;  %114 = vst [vmem:[%s345_s1 + $0x70] sm:$0xff] %v113_v1  ;;  %v117_v3 = vld [vmem:[%s344_s0 + $0xc0] sm:$0xff] }
   0x3   :  { %116 = vst [vmem:[%s345_s1 + $0x10] sm:$0xff] %v115_v2  ;;  %v119_v4 = vld [vmem:[%s344_s0 + $0x40] sm:$0xff]  ;;  %v121_v5 = vld [vmem:[%s344_s0 + $0xb0] sm:$0xff]  ;;  %118 = vst [vmem:[%s345_s1 + $0x80] sm:$0xff] %v117_v3 }
   0x4   :  { %120 = vst [vmem:[%s345_s1 + $0x20] sm:$0xff] %v119_v4  ;;  %122 = vst [vmem:[%s345_s1 + $0x90] sm:$0xff] %v121_v5  ;;  %v123_v6 = vld [vmem:[%s344_s0 + $0x30] sm:$0xff]  ;;  %v125_v7 = vld [vmem:[%s344_s0 + $0xa0] sm:$0xff] }
   0x5   :  { %v127_v8 = vld [vmem:[%s344_s0 + $0x20] sm:$0xff]  ;;  %124 = vst [vmem:[%s345_s1 + $0x30] sm:$0xff] %v123_v6  ;;  %126 = vst [vmem:[%s345_s1 + $0xa0] sm:$0xff] %v125_v7  ;;  %v129_v9 = vld [vmem:[%s344_s0 + $0x90] sm:$0xff] }
   0x6   :  { %128 = vst [vmem:[%s345_s1 + $0x40] sm:$0xff] %v127_v8  ;;  %v131_v10 = vld [vmem:[%s344_s0 + $0x10] sm:$0xff]  ;;  %v133_v11 = vld [vmem:[%s344_s0 + $0x80] sm:$0xff]  ;;  %130 = vst [vmem:[%s345_s1 + $0xb0] sm:$0xff] %v129_v9 }
   0x7   :  { %132 = vst [vmem:[%s345_s1 + $0x50] sm:$0xff] %v131_v10  ;;  %134 = vst [vmem:[%s345_s1 + $0xc0] sm:$0xff] %v133_v11  ;;  %v49_v12 = vld [vmem:[%s344_s0] sm:$0xff]  ;;  %v136_v13 = vld [vmem:[%s344_s0 + $0x70] sm:$0xff] }
   0x8   :  { %135 = vst [vmem:[%s345_s1 + $0x60] sm:$0xff] %v49_v12  ;;  %137 = vst [vmem:[%s345_s1 + $0xd0] sm:$0xff] %v136_v13  ;;  %v140_v15 = vld [vmem:[%s344_s0 + $0xd8] sm:$0xff]  ;;  %v144_v17 = vld [vmem:[%s344_s0 + $0xc8] sm:$0xff] }
   0x9   :  { %139 = vst [vmem:[%s345_s1 + $0x8] sm:$0xff] %v138_v14  ;;  %v142_v16 = vld [vmem:[%s344_s0 + $0x58] sm:$0xff]  ;;  %141 = vst [vmem:[%s345_s1 + $0x78] sm:$0xff] %v140_v15  ;;  %v146_v18 = vld [vmem:[%s344_s0 + $0x48] sm:$0xff] }
   0xa   :  { %143 = vst [vmem:[%s345_s1 + $0x18] sm:$0xff] %v142_v16  ;;  %145 = vst [vmem:[%s345_s1 + $0x88] sm:$0xff] %v144_v17  ;;  %v148_v19 = vld [vmem:[%s344_s0 + $0xb8] sm:$0xff]  ;;  %v152_v21 = vld [vmem:[%s344_s0 + $0xa8] sm:$0xff] }
   0xb   :  { %v150_v20 = vld [vmem:[%s344_s0 + $0x38] sm:$0xff]  ;;  %147 = vst [vmem:[%s345_s1 + $0x28] sm:$0xff] %v146_v18  ;;  %149 = vst [vmem:[%s345_s1 + $0x98] sm:$0xff] %v148_v19  ;;  %v154_v22 = vld [vmem:[%s344_s0 + $0x28] sm:$0xff] }
   0xc   :  { %151 = vst [vmem:[%s345_s1 + $0x38] sm:$0xff] %v150_v20  ;;  %v156_v23 = vld [vmem:[%s344_s0 + $0x98] sm:$0xff]  ;;  %153 = vst [vmem:[%s345_s1 + $0xa8] sm:$0xff] %v152_v21  ;;  %v160_v25 = vld [vmem:[%s344_s0 + $0x88] sm:$0xff] }
   0xd   :  { %155 = vst [vmem:[%s345_s1 + $0x48] sm:$0xff] %v154_v22  ;;  %157 = vst [vmem:[%s345_s1 + $0xb8] sm:$0xff] %v156_v23  ;;  %v158_v24 = vld [vmem:[%s344_s0 + $0x18] sm:$0xff]  ;;  %v162_v26 = vld [vmem:[%s344_s0 + $0x8] sm:$0xff] }
   0xe   :  { %159 = vst [vmem:[%s345_s1 + $0x58] sm:$0xff] %v158_v24  ;;  %161 = vst [vmem:[%s345_s1 + $0xc8] sm:$0xff] %v160_v25  ;;  %v164_v27 = vld [vmem:[%s344_s0 + $0x78] sm:$0xff] }
   0xf   :  { %163 = vst [vmem:[%s345_s1 + $0x68] sm:$0xff] %v162_v26  ;;  %165 = vst [vmem:[%s345_s1 + $0xd8] sm:$0xff] %v164_v27 }

// kernel: reverse.10
= control target key start
LH: loop header
LB: loop body
LE: loop exit
PB: predicated region body
PF: predicated region fallthrough
CT: control target
= control target key end

     0   :  { %s80_s0 = inlined_call_operand.vmem [shape: f32[2,12,8,3], index: 0, kind: input, shape index: {}]   ;;  %s81_s1 = inlined_call_operand.vmem [shape: f32[2,12,8,3], index: 1, kind: output, shape index: {}]  }
   0x1   :  { %v24_v0 = vld [vmem:[%s80_s0 + $0x10] sm:$0xff]  ;;  %v25_v1 = vld [vmem:[%s80_s0 + $0x28] sm:$0xff]  ;;  %v29_v3 = vld [vmem:[%s80_s0 + $0x20] sm:$0xff] }
   0x2   :  { %v27_v2 = vld [vmem:[%s80_s0 + $0x8] sm:$0xff]  ;;  %4 = vst [vmem:[%s81_s1] sm:$0xff] %v24_v0  ;;  %26 = vst [vmem:[%s81_s1 + $0x18] sm:$0xff] %v25_v1  ;;  %v17_v4 = vld [vmem:[%s80_s0] sm:$0xff] }
   0x3   :  { %28 = vst [vmem:[%s81_s1 + $0x8] sm:$0xff] %v27_v2  ;;  %v32_v5 = vld [vmem:[%s80_s0 + $0x18] sm:$0xff]  ;;  %30 = vst [vmem:[%s81_s1 + $0x20] sm:$0xff] %v29_v3 }
   0x4   :  { %31 = vst [vmem:[%s81_s1 + $0x10] sm:$0xff] %v17_v4  ;;  %33 = vst [vmem:[%s81_s1 + $0x28] sm:$0xff] %v32_v5 }

// kernel: ffc_block_forward.14
= control target key start
LH: loop header
LB: loop body
LE: loop exit
PB: predicated region body
PF: predicated region fallthrough
CT: control target
= control target key end

     0   :  { %s445_s9 = smov 0   ;;  %s447_s10 = smov 0   ;;  %s484_s0 = inlined_call_operand.vmem [shape: bf16[24,24], index: 0, kind: input, shape index: {}]   ;;  %s485_s1 = inlined_call_operand.vmem [shape: bf16[2,24,40], index: 1, kind: input, shape index: {}]   ;;  %s486_s2 = inlined_call_operand.vmem [shape: f32[2,24,40], index: 2, kind: output, shape index: {}]  }
   0x1   :  { %s449_s11 = smov 0  }
   0x2 LB: > { %s24_s12 = sadd.s32 1, %s424_s10  ;;  %p352_p0 = scmp.ge.s32.totalorder %s428_s11, 1  ;;  %s428_s11 = sphi %s449_s11, %s12_s11   ;;  %s424_s10 = sphi %s447_s10, %s488_s10   ;;  %s420_s9 = sphi %s445_s9, %s487_s9  }
   0x3   : > { %p26_p1 = scmp.ge.s32.totalorder %s24_s12, 2  ;;  %p131_p2 = scmp.lt.s32.totalorder %s428_s11, 3 }
   0x5   : > { %s490_s12 = smov (%p26_p1, %s24_s12), 0  ;;  %p132_p3 = pnand %p352_p0, %p131_p2 }
   0x6   : > { %p159_p4 = scmp.lt.s32.totalorder (!%p132_p3), %s420_s9, 1  ;;  %v404_v0 = vld [vmem:[%s484_s0] sm:$0xff] (!%p132_p3)   ;;  %vm199_vm0 = vcmask (!%p132_p3), 195584   ;;  %vm206_vm1 = vcmask (!%p132_p3), 1043456   ;;  %v405_v4 = vld [vmem:[%s484_s0 + $0x8] ss:$0 sps:$4 sm:$0xff] (!%p132_p3)  }
   0x7   : > { %135 = sbr.rel (%p132_p3) target bundleno = 245 (0xf5), region = 28  ;;  %371 = vmatprep.mubr.msk.bf16.mxu0 (!%p132_p3), %vm199_vm0, %v404_v0  ;;  %vm261_vm2 = vcmask (!%p132_p3), 326656  }
   0xe   : > { %s492_s9 = smov (!%p159_p4, %s420_s9), 1 }
   0xf   : > { %s376_s15 = smul.u32 12, %s492_s9 }
  0x10   : > { %s377_s21 = smul.u32 24, %s492_s9 }
  0x11   : > { %s166_s18 = scalar_lea.vmem %s485_s1, %s376_s15 }
  0x12   : > { %v402_v1 = vld [vmem:[%s166_s18] sm:$0xff]   ;;  %v403_v2 = vld [vmem:[%s166_s18 + $0x8] ss:$0 sps:$4 sm:$0xff]   ;;  %s174_s24 = scalar_lea.vmem %s486_s2, %s377_s21 }
  0x13   : > { %367 = vmatprep.subr.bf16.mxu0 %v402_v1  ;;  %v208_v3 = vsel %vm206_vm1, %v403_v2, 0 }
  0x14   : > { %368 = vmatpush3.bf16.msra.mxu0 %v402_v1 }
  0x15   : > { %375 = vmatprep.subr.msk.bf16.mxu0 %vm206_vm1, %v403_v2 }
  0x18   : > { %370 = vmatpush3.bf16.msra.mxu0 %v208_v3 }
  0x1b   : > { %372 = vmatmul.mubr.msk.bf16.vlgmr.msra.gmra.mrb[0].mxu0 %vm199_vm0, %v405_v4 }
  0xee   : > { %v373_v5 = vpop.f32.mrb[0].mxu0 }
  0xef   : > { %v260_v6 = vmax.f32 %v373_v5, 0.0  ;;  %v244_v7 = vpop.f32.mrb[1].mxu0 }
  0xf0   : > { %v258_v8 = vmax.f32 %v244_v7, 0.0  ;;  %v374_v9 = vpop.f32.mrb[2].mxu0 }
  0xf1   : > { %264 = vst.msk [vmem:[%s174_s24 + $0x10] sm:$0xff] %vm261_vm2, %v260_v6  ;;  %v247_v10 = vpop.f32.mrb[3].mxu0 }
  0xf2   : > { %262 = vst.msk [vmem:[%s174_s24] sm:$0xff] %vm261_vm2, %v258_v8  ;;  %v259_v11 = vmax.f32 %v247_v10, 0.0 }
  0xf4   : > { %263 = vst.msk [vmem:[%s174_s24 + $0x8] sm:$0xff] %vm261_vm2, %v259_v11 }
  0xf5 PF: > { %s12_s11 = sadd.s32 1, %s428_s11   ;;  %s487_s9 = smov %s424_s10 }
  0xf6   : > { %p9_p5 = scmp.ge.s32.totalorder %s12_s11, 4   ;;  %s488_s10 = smov %s490_s12 }
  0xf8   :  { %11 = sbr.rel (!%p9_p5) target bundleno = 2 (0x2), region = 58 }

// kernel: ffc_block_forward.15
= control target key start
LH: loop header
LB: loop body
LE: loop exit
PB: predicated region body
PF: predicated region fallthrough
CT: control target
= control target key end

     0   :  { %s532_s9 = smov 0   ;;  %s534_s10 = smov 0   ;;  %s575_s0 = inlined_call_operand.vmem [shape: bf16[32,72], index: 0, kind: input, shape index: {}]   ;;  %s576_s1 = inlined_call_operand.vmem [shape: bf16[2,72,256], index: 1, kind: input, shape index: {}]   ;;  %s577_s2 = inlined_call_operand.vmem [shape: f32[2,32,256], index: 2, kind: output, shape index: {}]  }
   0x1   :  { %s536_s11 = smov 0  }
   0x2 LB: > { %s24_s12 = sadd.s32 1, %s510_s10  ;;  %p418_p0 = scmp.ge.s32.totalorder %s514_s11, 1  ;;  %s514_s11 = sphi %s536_s11, %s12_s11   ;;  %s510_s10 = sphi %s534_s10, %s579_s10   ;;  %s506_s9 = sphi %s532_s9, %s578_s9  }
   0x3   : > { %p26_p1 = scmp.ge.s32.totalorder %s24_s12, 2  ;;  %p133_p2 = scmp.lt.s32.totalorder %s514_s11, 3 }
   0x5   : > { %s581_s12 = smov (%p26_p1, %s24_s12), 0  ;;  %p134_p3 = pnand %p418_p0, %p133_p2 }
   0x6   : > { %p164_p4 = scmp.lt.s32.totalorder (!%p134_p3), %s506_s9, 1  ;;  %v516_v0 = vmov (!%p134_p3), 0   ;;  %vm259_vm0 = vcmask (!%p134_p3), 1043456   ;;  %v490_v13 = vld [vmem:[%s575_s0] sm:$0xff] (!%p134_p3)   ;;  %v491_v14 = vld [vmem:[%s575_s0 + $0x8] sm:$0xff] (!%p134_p3)   ;;  %vm252_vm1 = vcmask (!%p134_p3), 588800  }
   0x7   : > { %137 = sbr.rel (%p134_p3) target bundleno = 255 (0xff), region = 28  ;;  %298 = vmatprep.mubr.bf16.mxu0 (!%p134_p3), %v516_v0  ;;  %308 = vmatprep.mubr.bf16.mxu1 (!%p134_p3), %v516_v0 }
   0xe   : > { %s583_s9 = smov (!%p164_p4, %s506_s9), 1 }
   0xf   : > { %s450_s13 = smul.u32 72, %s583_s9  ;;  %s439_s21 = sshll.u32 %s583_s9, 6 }
  0x10   : > { %s181_s24 = scalar_lea.vmem %s577_s2, %s439_s21 }
  0x11   : > { %s171_s16 = scalar_lea.vmem %s576_s1, %s450_s13 }
  0x12   : > { %v476_v1 = vld [vmem:[%s171_s16 + $0x4] ss:$8 sps:$4 sm:$0xff]   ;;  %v478_v2 = vld [vmem:[%s171_s16] ss:$8 sps:$4 sm:$0xff]   ;;  %v479_v3 = vld [vmem:[%s171_s16 + $0x14] ss:$8 sps:$4 sm:$0xff]  }
  0x13   : > { %266 = vmatprep.subr.bf16.mxu0 %v476_v1  ;;  %440 = vmatprep.subr.bf16.mxu1 %v476_v1  ;;  %v481_v4 = vld [vmem:[%s171_s16 + $0x10] ss:$8 sps:$4 sm:$0xff]   ;;  %v482_v5 = vld [vmem:[%s171_s16 + $0x24] ss:$8 sps:$4 sm:$0xff]   ;;  %v484_v6 = vld [vmem:[%s171_s16 + $0x20] ss:$8 sps:$4 sm:$0xff]  }
  0x14   : > { %267 = vmatpush1.bf16.msra.mxu0 %v478_v2  ;;  %445 = vmatpush1.bf16.msra.mxu1 %v478_v2  ;;  %v485_v7 = vld [vmem:[%s171_s16 + $0x34] ss:$8 sps:$4 sm:$0xff]   ;;  %v196_v8 = vld [vmem:[%s171_s16 + $0x40] sm:$0xff]  ;;  %v487_v9 = vld [vmem:[%s171_s16 + $0x30] ss:$8 sps:$4 sm:$0xff]  }
  0x15   : > { %268 = vmatprep.subr.bf16.mxu0 %v479_v3  ;;  %441 = vmatprep.subr.bf16.mxu1 %v479_v3  ;;  %v433_v10 = vcombine.high %v196_v8, %v196_v8  ;;  %v432_v11 = vcombine.low %v196_v8, %v196_v8 }
  0x17   : > { %v261_v12 = vsel %vm259_vm0, %v432_v11, 0 }
  0x18   : > { %269 = vmatpush1.bf16.msra.mxu0 %v481_v4  ;;  %446 = vmatpush1.bf16.msra.mxu1 %v481_v4 }
  0x19   : > { %270 = vmatprep.subr.bf16.mxu0 %v482_v5  ;;  %442 = vmatprep.subr.bf16.mxu1 %v482_v5 }
  0x1c   : > { %271 = vmatpush1.bf16.msra.mxu0 %v484_v6  ;;  %447 = vmatpush1.bf16.msra.mxu1 %v484_v6 }
  0x1d   : > { %272 = vmatprep.subr.bf16.mxu0 %v485_v7  ;;  %443 = vmatprep.subr.bf16.mxu1 %v485_v7 }
  0x20   : > { %273 = vmatpush1.bf16.msra.mxu0 %v487_v9  ;;  %448 = vmatpush1.bf16.msra.mxu1 %v487_v9 }
  0x21   : > { %434 = vmatprep.subr.msk.bf16.mxu0 %vm259_vm0, %v433_v10  ;;  %444 = vmatprep.subr.msk.bf16.mxu1 %vm259_vm0, %v433_v10 }
  0x24   : > { %275 = vmatpush1.bf16.msra.mxu0 %v261_v12  ;;  %449 = vmatpush1.bf16.msra.mxu1 %v261_v12 }
  0x27   : > { %435 = vmatmul.mubr.msk.bf16.vlgmr.msra.gmra.mrb[0].mxu0 %vm252_vm1, %v490_v13  ;;  %436 = vmatmul.mubr.msk.bf16.vlgmr.msra.gmra.mrb[0].mxu1 %vm252_vm1, %v491_v14 }
  0xfa   : > { %v300_v15 = vpop.f32.mrb[0].mxu0  ;;  %v310_v16 = vpop.f32.mrb[0].mxu1 }
  0xfb   : > { %319 = vst [vmem:[%s181_s24] sm:$0xff] %v300_v15  ;;  %323 = vst [vmem:[%s181_s24 + $0x20] sm:$0xff] %v310_v16  ;;  %v302_v17 = vpop.f32.mrb[1].mxu0  ;;  %v312_v18 = vpop.f32.mrb[1].mxu1 }
  0xfc   : > { %320 = vst [vmem:[%s181_s24 + $0x8] sm:$0xff] %v302_v17  ;;  %324 = vst [vmem:[%s181_s24 + $0x28] sm:$0xff] %v312_v18  ;;  %v304_v19 = vpop.f32.mrb[2].mxu0  ;;  %v314_v20 = vpop.f32.mrb[2].mxu1 }
  0xfd   : > { %321 = vst [vmem:[%s181_s24 + $0x10] sm:$0xff] %v304_v19  ;;  %325 = vst [vmem:[%s181_s24 + $0x30] sm:$0xff] %v314_v20  ;;  %v306_v21 = vpop.f32.mrb[3].mxu0  ;;  %v316_v22 = vpop.f32.mrb[3].mxu1 }
  0xfe   : > { %322 = vst [vmem:[%s181_s24 + $0x18] sm:$0xff] %v306_v21  ;;  %326 = vst [vmem:[%s181_s24 + $0x38] sm:$0xff] %v316_v22 }
  0xff PF: > { %s12_s11 = sadd.s32 1, %s514_s11   ;;  %s578_s9 = smov %s510_s10 }
 0x100   : > { %p9_p5 = scmp.ge.s32.totalorder %s12_s11, 4   ;;  %s579_s10 = smov %s581_s12 }
 0x102   :  { %11 = sbr.rel (!%p9_p5) target bundleno = 2 (0x2), region = 58 }

// kernel: ffc_block_forward.16
= control target key start
LH: loop header
LB: loop body
LE: loop exit
PB: predicated region body
PF: predicated region fallthrough
CT: control target
= control target key end

     0   :  { %s547_s12 = smov 0   ;;  %s549_s13 = smov 0   ;;  %s589_s0 = inlined_call_operand.vmem [shape: bf16[24,12], index: 0, kind: input, shape index: {}]   ;;  %s590_s1 = inlined_call_operand.vmem [shape: bf16[2,12,256], index: 1, kind: input, shape index: {}]   ;;  %s591_s2 = inlined_call_operand.vmem [shape: f32[2,24,256], index: 2, kind: input, shape index: {}]   ;;  %s592_s3 = inlined_call_operand.vmem [shape: f32[2,24,256], index: 3, kind: output, shape index: {}]  }
   0x1   :  { %s551_s14 = smov 0  }
   0x2 LB: > { %s25_s15 = sadd.s32 1, %s520_s13  ;;  %p454_p0 = scmp.ge.s32.totalorder %s524_s14, 1  ;;  %s524_s14 = sphi %s551_s14, %s13_s14   ;;  %s520_s13 = sphi %s549_s13, %s594_s13   ;;  %s516_s12 = sphi %s547_s12, %s593_s12  }
   0x3   : > { %p27_p1 = scmp.ge.s32.totalorder %s25_s15, 2  ;;  %p175_p2 = scmp.lt.s32.totalorder %s524_s14, 3 }
   0x5   : > { %s596_s15 = smov (%p27_p1, %s25_s15), 0  ;;  %p176_p3 = pnand %p454_p0, %p175_p2 }
   0x6   : > { %p217_p4 = scmp.lt.s32.totalorder (!%p176_p3), %s516_s12, 1  ;;  %v526_v0 = vmov (!%p176_p3), 0   ;;  %vm281_vm0 = vcmask (!%p176_p3), 1045504   ;;  %v500_v4 = vld [vmem:[%s589_s0] sm:$0xff] (!%p176_p3)   ;;  %v501_v5 = vld [vmem:[%s589_s0 + $0x8] ss:$0 sps:$4 sm:$0xff] (!%p176_p3)  }
   0x7   : > { %179 = sbr.rel (%p176_p3) target bundleno = 240 (0xf0), region = 32  ;;  %320 = vmatprep.mubr.bf16.mxu0 (!%p176_p3), %v526_v0  ;;  %330 = vmatprep.mubr.bf16.mxu1 (!%p176_p3), %v526_v0  ;;  %vm274_vm1 = vcmask (!%p176_p3), 97280  }
   0xe   : > { %s598_s12 = smov (!%p217_p4, %s516_s12), 1 }
   0xf   : > { %s468_s16 = sshll.u32 %s598_s12, 4  ;;  %s471_s24 = smul.u32 48, %s598_s12 }
  0x10   : > { %s224_s19 = scalar_lea.vmem %s590_s1, %s468_s16 }
  0x11   : > { %v497_v1 = vld [vmem:[%s224_s19 + $0x4] ss:$8 sps:$4 sm:$0x3f]   ;;  %v499_v2 = vld [vmem:[%s224_s19] ss:$8 sps:$4 sm:$0x3f]   ;;  %s234_s27 = scalar_lea.vmem %s591_s2, %s471_s24  ;;  %s244_s30 = scalar_lea.vmem %s592_s3, %s471_s24 }
  0x12   : > { %463 = vmatprep.subr.msk.bf16.mxu0 %vm281_vm0, %v497_v1  ;;  %469 = vmatprep.subr.msk.bf16.mxu1 %vm281_vm0, %v497_v1  ;;  %v283_v3 = vsel %vm281_vm0, %v499_v2, 0  ;;  %v252_v6 = vld [vmem:[%s234_s27] sm:$0xff]  ;;  %v253_v8 = vld [vmem:[%s234_s27 + $0x8] sm:$0xff]  ;;  %v254_v12 = vld [vmem:[%s234_s27 + $0x10] sm:$0xff] }
  0x13   : > { %289 = vmatpush1.bf16.msra.mxu0 %v283_v3  ;;  %470 = vmatpush1.bf16.msra.mxu1 %v283_v3  ;;  %v256_v7 = vld [vmem:[%s234_s27 + $0x20] sm:$0xff]  ;;  %v257_v9 = vld [vmem:[%s234_s27 + $0x28] sm:$0xff]  ;;  %v255_v17 = vld [vmem:[%s234_s27 + $0x18] sm:$0xff] }
  0x16   : > { %464 = vmatmul.mubr.msk.bf16.vlgmr.msra.gmra.mrb[0].mxu0 %vm274_vm1, %v500_v4  ;;  %465 = vmatmul.mubr.msk.bf16.vlgmr.msra.gmra.mrb[0].mxu1 %vm274_vm1, %v501_v5 }
  0xe9   : > { %v322_v10 = vpop.f32.mrb[0].mxu0  ;;  %v332_v11 = vpop.f32.mrb[0].mxu1 }
  0xea   : > { %v323_v13 = vadd.f32 %v322_v10, %v252_v6  ;;  %v333_v14 = vadd.f32 %v332_v11, %v256_v7  ;;  %v324_v15 = vpop.f32.mrb[1].mxu0  ;;  %v334_v16 = vpop.f32.mrb[1].mxu1 }
  0xeb   : > { %v325_v18 = vadd.f32 %v324_v15, %v253_v8  ;;  %v335_v19 = vadd.f32 %v334_v16, %v257_v9  ;;  %v326_v20 = vpop.f32.mrb[2].mxu0  ;;  %v336_v21 = vpop.f32.mrb[2].mxu1 }
  0xec   : > { %339 = vst [vmem:[%s244_s30] sm:$0xff] %v323_v13  ;;  %343 = vst [vmem:[%s244_s30 + $0x20] sm:$0xff] %v333_v14  ;;  %v327_v22 = vadd.f32 %v326_v20, %v254_v12  ;;  %v328_v23 = vpop.f32.mrb[3].mxu0  ;;  %v337_v24 = vpop.f32.mrb[3].mxu1 }
  0xed   : > { %340 = vst [vmem:[%s244_s30 + $0x8] sm:$0xff] %v325_v18  ;;  %344 = vst [vmem:[%s244_s30 + $0x28] sm:$0xff] %v335_v19  ;;  %v329_v25 = vadd.f32 %v328_v23, %v255_v17 }
  0xee   : > { %341 = vst [vmem:[%s244_s30 + $0x10] sm:$0xff] %v327_v22 }
  0xef   : > { %342 = vst [vmem:[%s244_s30 + $0x18] sm:$0xff] %v329_v25 }
  0xf0 PF: > { %s13_s14 = sadd.s32 1, %s524_s14   ;;  %s593_s12 = smov %s520_s13 }
  0xf1   : > { %p10_p5 = scmp.ge.s32.totalorder %s13_s14, 4   ;;  %s594_s13 = smov %s596_s15 }
  0xf3   :  { %12 = sbr.rel (!%p10_p5) target bundleno = 2 (0x2), region = 65 }

// kernel: ffc_block_forward.17
= control target key start
LH: loop header
LB: loop body
LE: loop exit
PB: predicated region body
PF: predicated region fallthrough
CT: control target
= control target key end

     0   :  { %s735_s12 = smov 0   ;;  %s737_s13 = smov 0   ;;  %s813_s0 = inlined_call_operand.vmem [shape: bf16[8,216], index: 0, kind: input, shape index: {}]   ;;  %s814_s1 = inlined_call_operand.vmem [shape: bf16[2,216,256], index: 1, kind: input, shape index: {}]   ;;  %s815_s2 = inlined_call_operand.vmem [shape: f32[2,8,256], index: 2, kind: input, shape index: {}]   ;;  %s816_s3 = inlined_call_operand.vmem [shape: f32[2,8,256], index: 3, kind: output, shape index: {}]  }
   0x1   :  { %s739_s14 = smov 0  }
   0x2 LB: > { %s25_s15 = sadd.s32 1, %s709_s13  ;;  %p581_p0 = scmp.ge.s32.totalorder %s713_s14, 1  ;;  %s713_s14 = sphi %s739_s14, %s13_s14   ;;  %s709_s13 = sphi %s737_s13, %s818_s13   ;;  %s705_s12 = sphi %s735_s12, %s817_s12  }
   0x3   : > { %p27_p1 = scmp.ge.s32.totalorder %s25_s15, 2  ;;  %p175_p2 = scmp.lt.s32.totalorder %s713_s14, 3 }
   0x5   : > { %s820_s15 = smov (%p27_p1, %s25_s15), 0  ;;  %p176_p3 = pnand %p581_p0, %p175_p2 }
   0x6   : > { %p217_p4 = scmp.lt.s32.totalorder (!%p176_p3), %s705_s12, 1  ;;  %v756_v0 = vld [vmem:[%s813_s0] sm:$0xff] (!%p176_p3)  ;;  %vm418_vm0 = vcmask (!%p176_p3), 719872   ;;  %vm422_vm1 = vcmask (!%p176_p3), 1043456  }
   0x7   : > { %179 = sbr.rel (%p176_p3) target bundleno = 291 (0x123), region = 32  ;;  %v588_v1 = vcombine.high (!%p176_p3), %v756_v0, %v756_v0  ;;  %v587_v32 = vcombine.low (!%p176_p3), %v756_v0, %v756_v0 }
   0x9   : > { %618 = vmatprep.mubr.msk.bf16.mxu0 (!%p176_p3), %vm418_vm0, %v588_v1 }
   0xe   : > { %s822_s12 = smov (!%p217_p4, %s705_s12), 1 }
   0xf   : > { %s623_s18 = smul.u32 216, %s822_s12  ;;  %s621_s22 = sshll.u32 %s822_s12, 4 }
  0x10   : > { %s234_s25 = scalar_lea.vmem %s815_s2, %s621_s22  ;;  %s244_s28 = scalar_lea.vmem %s816_s3, %s621_s22 }
  0x11   : > { %s766_s21 = scalar_lea.vmem %s814_s1, %s623_s18  ;;  %v275_v33 = vld [vmem:[%s234_s25] sm:$0xff]  ;;  %v276_v34 = vld [vmem:[%s234_s25 + $0x8] sm:$0xff] }
  0x12   : > { %v648_v2 = vld [vmem:[%s766_s21 + $0x4] ss:$8 sps:$4 sm:$0xff]   ;;  %v650_v3 = vld [vmem:[%s766_s21] ss:$8 sps:$4 sm:$0xff]   ;;  %v651_v4 = vld [vmem:[%s766_s21 + $0x14] ss:$8 sps:$4 sm:$0xff]  }
  0x13   : > { %429 = vmatprep.subr.bf16.mxu0 %v648_v2  ;;  %v653_v5 = vld [vmem:[%s766_s21 + $0x10] ss:$8 sps:$4 sm:$0xff]   ;;  %v654_v6 = vld [vmem:[%s766_s21 + $0x24] ss:$8 sps:$4 sm:$0xff]   ;;  %v656_v7 = vld [vmem:[%s766_s21 + $0x20] ss:$8 sps:$4 sm:$0xff]  }
  0x14   : > { %430 = vmatpush1.bf16.msra.mxu0 %v650_v3  ;;  %v657_v8 = vld [vmem:[%s766_s21 + $0x34] ss:$8 sps:$4 sm:$0xff]   ;;  %v659_v9 = vld [vmem:[%s766_s21 + $0x30] ss:$8 sps:$4 sm:$0xff]   ;;  %v660_v10 = vld [vmem:[%s766_s21 + $0x44] ss:$8 sps:$4 sm:$0xff]  }
  0x15   : > { %431 = vmatprep.subr.bf16.mxu0 %v651_v4  ;;  %v662_v11 = vld [vmem:[%s766_s21 + $0x40] ss:$8 sps:$4 sm:$0xff]   ;;  %v663_v12 = vld [vmem:[%s766_s21 + $0x54] ss:$8 sps:$4 sm:$0xff]   ;;  %v665_v13 = vld [vmem:[%s766_s21 + $0x50] ss:$8 sps:$4 sm:$0xff]  }
  0x16   : > { %v666_v14 = vld [vmem:[%s766_s21 + $0x64] ss:$8 sps:$4 sm:$0xff]   ;;  %v668_v15 = vld [vmem:[%s766_s21 + $0x60] ss:$8 sps:$4 sm:$0xff]   ;;  %v669_v16 = vld [vmem:[%s766_s21 + $0x74] ss:$8 sps:$4 sm:$0xff]  }
  0x17   : > { %v671_v17 = vld [vmem:[%s766_s21 + $0x70] ss:$8 sps:$4 sm:$0xff]   ;;  %v672_v18 = vld [vmem:[%s766_s21 + $0x84] ss:$8 sps:$4 sm:$0xff]   ;;  %v674_v19 = vld [vmem:[%s766_s21 + $0x80] ss:$8 sps:$4 sm:$0xff]  }
  0x18   : > { %432 = vmatpush1.bf16.msra.mxu0 %v653_v5  ;;  %v675_v20 = vld [vmem:[%s766_s21 + $0x94] ss:$8 sps:$4 sm:$0xff]   ;;  %v677_v21 = vld [vmem:[%s766_s21 + $0x90] ss:$8 sps:$4 sm:$0xff]   ;;  %v678_v22 = vld [vmem:[%s766_s21 + $0xa4] ss:$8 sps:$4 sm:$0xff]  }
  0x19   : > { %433 = vmatprep.subr.bf16.mxu0 %v654_v6  ;;  %v680_v23 = vld [vmem:[%s766_s21 + $0xa0] ss:$8 sps:$4 sm:$0xff]   ;;  %v681_v24 = vld [vmem:[%s766_s21 + $0xb4] ss:$8 sps:$4 sm:$0xff]   ;;  %v683_v25 = vld [vmem:[%s766_s21 + $0xb0] ss:$8 sps:$4 sm:$0xff]  }
  0x1a   : > { %v684_v26 = vld [vmem:[%s766_s21 + $0xc4] ss:$8 sps:$4 sm:$0xff]   ;;  %v274_v27 = vld [vmem:[%s766_s21 + $0xd0] sm:$0xff]  ;;  %v686_v28 = vld [vmem:[%s766_s21 + $0xc0] ss:$8 sps:$4 sm:$0xff]  }
  0x1b   : > { %v616_v29 = vcombine.high %v274_v27, %v274_v27  ;;  %v615_v30 = vcombine.low %v274_v27, %v274_v27 }
  0x1c   : > { %434 = vmatpush1.bf16.msra.mxu0 %v656_v7 }
  0x1d   : > { %435 = vmatprep.subr.bf16.mxu0 %v657_v8  ;;  %v424_v31 = vsel %vm422_vm1, %v615_v30, 0 }
  0x20   : > { %436 = vmatpush1.bf16.msra.mxu0 %v659_v9 }
  0x21   : > { %437 = vmatprep.subr.bf16.mxu0 %v660_v10 }
  0x24   : > { %438 = vmatpush1.bf16.msra.mxu0 %v662_v11 }
  0x25   : > { %439 = vmatprep.subr.bf16.mxu0 %v663_v12 }
  0x28   : > { %440 = vmatpush1.bf16.msra.mxu0 %v665_v13 }
  0x29   : > { %441 = vmatprep.subr.bf16.mxu0 %v666_v14 }
  0x2c   : > { %442 = vmatpush1.bf16.msra.mxu0 %v668_v15 }
  0x2d   : > { %443 = vmatprep.subr.bf16.mxu0 %v669_v16 }
  0x30   : > { %444 = vmatpush1.bf16.msra.mxu0 %v671_v17 }
  0x31   : > { %445 = vmatprep.subr.bf16.mxu0 %v672_v18 }
  0x34   : > { %446 = vmatpush1.bf16.msra.mxu0 %v674_v19 }
  0x35   : > { %447 = vmatprep.subr.bf16.mxu0 %v675_v20 }
  0x38   : > { %448 = vmatpush1.bf16.msra.mxu0 %v677_v21 }
  0x39   : > { %449 = vmatprep.subr.bf16.mxu0 %v678_v22 }
  0x3c   : > { %450 = vmatpush1.bf16.msra.mxu0 %v680_v23 }
  0x3d   : > { %451 = vmatprep.subr.bf16.mxu0 %v681_v24 }
  0x40   : > { %452 = vmatpush1.bf16.msra.mxu0 %v683_v25 }
  0x41   : > { %453 = vmatprep.subr.bf16.mxu0 %v684_v26 }
  0x44   : > { %454 = vmatpush1.bf16.msra.mxu0 %v686_v28 }
  0x45   : > { %617 = vmatprep.subr.msk.bf16.mxu0 %vm422_vm1, %v616_v29 }
  0x48   : > { %456 = vmatpush1.bf16.msra.mxu0 %v424_v31 }
  0x4b   : > { %462 = vmatmul.mubr.bf16.vlgmr.msra.gmra.mrb[0].mxu0 %v587_v32 }
 0x11e   : > { %v463_v35 = vpop.f32.mrb[0].mxu0 }
 0x11f   : > { %v464_v36 = vadd.f32 %v463_v35, %v275_v33  ;;  %v465_v37 = vpop.f32.mrb[1].mxu0 }
 0x120   : > { %v466_v38 = vadd.f32 %v465_v37, %v276_v34  ;;  %v467_v39 = vpop.f32.mrb[2].mxu0 }
 0x121   : > { %470 = vst [vmem:[%s244_s28] sm:$0xff] %v464_v36  ;;  %v468_v40 = vpop.f32.mrb[3].mxu0 }
 0x122   : > { %471 = vst [vmem:[%s244_s28 + $0x8] sm:$0xff] %v466_v38 }
 0x123 PF: > { %s13_s14 = sadd.s32 1, %s713_s14   ;;  %s817_s12 = smov %s709_s13 }
 0x124   : > { %p10_p5 = scmp.ge.s32.totalorder %s13_s14, 4   ;;  %s818_s13 = smov %s820_s15 }
 0x126   :  { %12 = sbr.rel (!%p10_p5) target bundleno = 2 (0x2), region = 65 }

// kernel: ffc_block_forward.23
= control target key start
LH: loop header
LB: loop body
LE: loop exit
PB: predicated region body
PF: predicated region fallthrough
CT: control target
= control target key end

     0   :  { %s652_s15 = smov 0   ;;  %s654_s16 = smov 0   ;;  %s697_s0 = inlined_call_operand.vmem [shape: bf16[24,12], index: 0, kind: input, shape index: {}]   ;;  %s698_s1 = inlined_call_operand.vmem [shape: bf16[2,12,256], index: 1, kind: input, shape index: {}]   ;;  %s699_s2 = inlined_call_operand.vmem [shape: f32[2,24,256], index: 2, kind: input, shape index: {}]   ;;  %s700_s3 = inlined_call_operand.vmem [shape: f32[2,24,256], index: 3, kind: input, shape index: {}]   ;;  %s701_s4 = inlined_call_operand.vmem [shape: f32[2,24,256], index: 4, kind: output, shape index: {}]  }
   0x1   :  { %s656_s17 = smov 0  }
   0x2 LB: > { %s26_s18 = sadd.s32 1, %s620_s16  ;;  %p553_p0 = scmp.ge.s32.totalorder %s624_s17, 1  ;;  %s624_s17 = sphi %s656_s17, %s14_s17   ;;  %s620_s16 = sphi %s654_s16, %s703_s16   ;;  %s616_s15 = sphi %s652_s15, %s702_s15  }
   0x3   : > { %p28_p1 = scmp.ge.s32.totalorder %s26_s18, 2  ;;  %p217_p2 = scmp.lt.s32.totalorder %s624_s17, 3 }
   0x5   : > { %s705_s18 = smov (%p28_p1, %s26_s18), 0  ;;  %p218_p3 = pnand %p553_p0, %p217_p2 }
   0x6   : > { %p270_p4 = scmp.lt.s32.totalorder (!%p218_p3), %s616_s15, 1  ;;  %v626_v0 = vmov (!%p218_p3), 0   ;;  %vm344_vm0 = vcmask (!%p218_p3), 1045504   ;;  %v600_v4 = vld [vmem:[%s697_s0] sm:$0xff] (!%p218_p3)   ;;  %v601_v5 = vld [vmem:[%s697_s0 + $0x8] ss:$0 sps:$4 sm:$0xff] (!%p218_p3)  }
   0x7   : > { %221 = sbr.rel (%p218_p3) target bundleno = 242 (0xf2), region = 36  ;;  %383 = vmatprep.mubr.bf16.mxu0 (!%p218_p3), %v626_v0  ;;  %393 = vmatprep.mubr.bf16.mxu1 (!%p218_p3), %v626_v0  ;;  %vm337_vm1 = vcmask (!%p218_p3), 97280  }
   0xe   : > { %s707_s15 = smov (!%p270_p4, %s616_s15), 1 }
   0xf   : > { %s568_s19 = sshll.u32 %s707_s15, 4  ;;  %s571_s27 = smul.u32 48, %s707_s15 }
  0x10   : > { %s277_s22 = scalar_lea.vmem %s698_s1, %s568_s19 }
  0x11   : > { %v597_v1 = vld [vmem:[%s277_s22 + $0x4] ss:$8 sps:$4 sm:$0x3f]   ;;  %v599_v2 = vld [vmem:[%s277_s22] ss:$8 sps:$4 sm:$0x3f]   ;;  %s297_s30 = scalar_lea.vmem %s700_s3, %s571_s27  ;;  %s287_s7 = scalar_lea.vmem %s699_s2, %s571_s27 }
  0x12   : > { %563 = vmatprep.subr.msk.bf16.mxu0 %vm344_vm0, %v597_v1  ;;  %569 = vmatprep.subr.msk.bf16.mxu1 %vm344_vm0, %v597_v1  ;;  %v346_v3 = vsel %vm344_vm0, %v599_v2, 0  ;;  %v402_v6 = vld [vmem:[%s297_s30] sm:$0xff]  ;;  %v403_v8 = vld [vmem:[%s297_s30 + $0x8] sm:$0xff]  ;;  %v404_v12 = vld [vmem:[%s297_s30 + $0x10] sm:$0xff]  ;;  %s307_s10 = scalar_lea.vmem %s701_s4, %s571_s27 }
  0x13   : > { %352 = vmatpush1.bf16.msra.mxu0 %v346_v3  ;;  %570 = vmatpush1.bf16.msra.mxu1 %v346_v3  ;;  %v406_v7 = vld [vmem:[%s297_s30 + $0x20] sm:$0xff]  ;;  %v407_v9 = vld [vmem:[%s297_s30 + $0x28] sm:$0xff]  ;;  %v408_v13 = vmul.f32 3.0, %v402_v6  ;;  %v405_v17 = vld [vmem:[%s297_s30 + $0x18] sm:$0xff]  ;;  %v409_v20 = vmul.f32 3.0, %v403_v8  ;;  %v410_v27 = vmul.f32 3.0, %v404_v12 }
  0x14   : > { %v315_v10 = vld [vmem:[%s287_s7] sm:$0xff]  ;;  %v412_v14 = vmul.f32 3.0, %v406_v7  ;;  %v316_v15 = vld [vmem:[%s287_s7 + $0x8] sm:$0xff]  ;;  %v413_v21 = vmul.f32 3.0, %v407_v9  ;;  %v317_v22 = vld [vmem:[%s287_s7 + $0x10] sm:$0xff]  ;;  %v411_v33 = vmul.f32 3.0, %v405_v17 }
  0x15   : > { %v319_v11 = vld [vmem:[%s287_s7 + $0x20] sm:$0xff]  ;;  %v320_v16 = vld [vmem:[%s287_s7 + $0x28] sm:$0xff]  ;;  %v318_v28 = vld [vmem:[%s287_s7 + $0x18] sm:$0xff] }
  0x16   : > { %564 = vmatmul.mubr.msk.bf16.vlgmr.msra.gmra.mrb[0].mxu0 %vm337_vm1, %v600_v4  ;;  %565 = vmatmul.mubr.msk.bf16.vlgmr.msra.gmra.mrb[0].mxu1 %vm337_vm1, %v601_v5 }
  0xe9   : > { %v385_v18 = vpop.f32.mrb[0].mxu0  ;;  %v395_v19 = vpop.f32.mrb[0].mxu1 }
  0xea   : > { %v386_v23 = vadd.f32 %v385_v18, %v315_v10  ;;  %v396_v24 = vadd.f32 %v395_v19, %v319_v11  ;;  %v387_v25 = vpop.f32.mrb[1].mxu0  ;;  %v397_v26 = vpop.f32.mrb[1].mxu1 }
  0xeb   : > { %v388_v29 = vadd.f32 %v387_v25, %v316_v15  ;;  %v398_v30 = vadd.f32 %v397_v26, %v320_v16  ;;  %v389_v31 = vpop.f32.mrb[2].mxu0  ;;  %v399_v32 = vpop.f32.mrb[2].mxu1 }
  0xec   : > { %v414_v34 = vadd.f32 %v408_v13, %v386_v23  ;;  %v418_v35 = vadd.f32 %v412_v14, %v396_v24  ;;  %v390_v36 = vadd.f32 %v389_v31, %v317_v22  ;;  %v391_v37 = vpop.f32.mrb[3].mxu0  ;;  %v400_v38 = vpop.f32.mrb[3].mxu1 }
  0xed   : > { %v415_v39 = vadd.f32 %v409_v20, %v388_v29  ;;  %v419_v40 = vadd.f32 %v413_v21, %v398_v30  ;;  %v392_v41 = vadd.f32 %v391_v37, %v318_v28 }
  0xee   : > { %420 = vst [vmem:[%s307_s10] sm:$0xff] %v414_v34  ;;  %424 = vst [vmem:[%s307_s10 + $0x20] sm:$0xff] %v418_v35  ;;  %v416_v42 = vadd.f32 %v410_v27, %v390_v36 }
  0xef   : > { %421 = vst [vmem:[%s307_s10 + $0x8] sm:$0xff] %v415_v39  ;;  %425 = vst [vmem:[%s307_s10 + $0x28] sm:$0xff] %v419_v40  ;;  %v417_v43 = vadd.f32 %v411_v33, %v392_v41 }
  0xf0   : > { %422 = vst [vmem:[%s307_s10 + $0x10] sm:$0xff] %v416_v42 }
  0xf1   : > { %423 = vst [vmem:[%s307_s10 + $0x18] sm:$0xff] %v417_v43 }
  0xf2 PF: > { %s14_s17 = sadd.s32 1, %s624_s17   ;;  %s702_s15 = smov %s620_s16 }
  0xf3   : > { %p11_p5 = scmp.ge.s32.totalorder %s14_s17, 4   ;;  %s703_s16 = smov %s705_s18 }
  0xf5   :  { %13 = sbr.rel (!%p11_p5) target bundleno = 2 (0x2), region = 72 }

// kernel: ffc_block_forward.19
= control target key start
LH: loop header
LB: loop body
LE: loop exit
PB: predicated region body
PF: predicated region fallthrough
CT: control target
= control target key end

     0   :  { %s830_s15 = smov 0   ;;  %s832_s16 = smov 0   ;;  %s911_s0 = inlined_call_operand.vmem [shape: bf16[8,216], index: 0, kind: input, shape index: {}]   ;;  %s912_s1 = inlined_call_operand.vmem [shape: bf16[2,216,256], index: 1, kind: input, shape index: {}]   ;;  %s913_s2 = inlined_call_operand.vmem [shape: f32[2,8,256], index: 2, kind: input, shape index: {}]   ;;  %s914_s3 = inlined_call_operand.vmem [shape: f32[2,8,256], index: 3, kind: input, shape index: {}]   ;;  %s915_s4 = inlined_call_operand.vmem [shape: f32[2,8,256], index: 4, kind: output, shape index: {}]  }
   0x1   :  { %s834_s17 = smov 0  }
   0x2 LB: > { %s26_s18 = sadd.s32 1, %s799_s16  ;;  %p668_p0 = scmp.ge.s32.totalorder %s803_s17, 1  ;;  %s803_s17 = sphi %s834_s17, %s14_s17   ;;  %s799_s16 = sphi %s832_s16, %s917_s16   ;;  %s795_s15 = sphi %s830_s15, %s916_s15  }
   0x3   : > { %p28_p1 = scmp.ge.s32.totalorder %s26_s18, 2  ;;  %p217_p2 = scmp.lt.s32.totalorder %s803_s17, 3 }
   0x5   : > { %s919_s18 = smov (%p28_p1, %s26_s18), 0  ;;  %p218_p3 = pnand %p668_p0, %p217_p2 }
   0x6   : > { %p270_p4 = scmp.lt.s32.totalorder (!%p218_p3), %s795_s15, 1  ;;  %v851_v0 = vld [vmem:[%s911_s0] sm:$0xff] (!%p218_p3)  ;;  %vm481_vm0 = vcmask (!%p218_p3), 719872   ;;  %vm485_vm1 = vcmask (!%p218_p3), 1043456  }
   0x7   : > { %221 = sbr.rel (%p218_p3) target bundleno = 293 (0x125), region = 36  ;;  %v677_v1 = vcombine.high (!%p218_p3), %v851_v0, %v851_v0  ;;  %v676_v32 = vcombine.low (!%p218_p3), %v851_v0, %v851_v0 }
   0x9   : > { %707 = vmatprep.mubr.msk.bf16.mxu0 (!%p218_p3), %vm481_vm0, %v677_v1 }
   0xe   : > { %s921_s15 = smov (!%p270_p4, %s795_s15), 1 }
   0xf   : > { %s713_s21 = smul.u32 216, %s921_s15  ;;  %s710_s25 = sshll.u32 %s921_s15, 4 }
  0x10   : > { %s297_s28 = scalar_lea.vmem %s914_s3, %s710_s25  ;;  %s287_s5 = scalar_lea.vmem %s913_s2, %s710_s25 }
  0x11   : > { %s861_s24 = scalar_lea.vmem %s912_s1, %s713_s21  ;;  %v533_v33 = vld [vmem:[%s297_s28] sm:$0xff]  ;;  %v534_v34 = vld [vmem:[%s297_s28 + $0x8] sm:$0xff]  ;;  %s307_s8 = scalar_lea.vmem %s915_s4, %s710_s25 }
  0x12   : > { %v738_v2 = vld [vmem:[%s861_s24 + $0x4] ss:$8 sps:$4 sm:$0xff]   ;;  %v740_v3 = vld [vmem:[%s861_s24] ss:$8 sps:$4 sm:$0xff]   ;;  %v741_v4 = vld [vmem:[%s861_s24 + $0x14] ss:$8 sps:$4 sm:$0xff]  }
  0x13   : > { %492 = vmatprep.subr.bf16.mxu0 %v738_v2  ;;  %v743_v5 = vld [vmem:[%s861_s24 + $0x10] ss:$8 sps:$4 sm:$0xff]   ;;  %v744_v6 = vld [vmem:[%s861_s24 + $0x24] ss:$8 sps:$4 sm:$0xff]   ;;  %v746_v7 = vld [vmem:[%s861_s24 + $0x20] ss:$8 sps:$4 sm:$0xff]  }
  0x14   : > { %493 = vmatpush1.bf16.msra.mxu0 %v740_v3  ;;  %v747_v8 = vld [vmem:[%s861_s24 + $0x34] ss:$8 sps:$4 sm:$0xff]   ;;  %v749_v9 = vld [vmem:[%s861_s24 + $0x30] ss:$8 sps:$4 sm:$0xff]   ;;  %v750_v10 = vld [vmem:[%s861_s24 + $0x44] ss:$8 sps:$4 sm:$0xff]  }
  0x15   : > { %494 = vmatprep.subr.bf16.mxu0 %v741_v4  ;;  %v752_v11 = vld [vmem:[%s861_s24 + $0x40] ss:$8 sps:$4 sm:$0xff]   ;;  %v753_v12 = vld [vmem:[%s861_s24 + $0x54] ss:$8 sps:$4 sm:$0xff]   ;;  %v755_v13 = vld [vmem:[%s861_s24 + $0x50] ss:$8 sps:$4 sm:$0xff]  }
  0x16   : > { %v756_v14 = vld [vmem:[%s861_s24 + $0x64] ss:$8 sps:$4 sm:$0xff]   ;;  %v758_v15 = vld [vmem:[%s861_s24 + $0x60] ss:$8 sps:$4 sm:$0xff]   ;;  %v759_v16 = vld [vmem:[%s861_s24 + $0x74] ss:$8 sps:$4 sm:$0xff]  }
  0x17   : > { %v761_v17 = vld [vmem:[%s861_s24 + $0x70] ss:$8 sps:$4 sm:$0xff]   ;;  %v762_v18 = vld [vmem:[%s861_s24 + $0x84] ss:$8 sps:$4 sm:$0xff]   ;;  %v764_v19 = vld [vmem:[%s861_s24 + $0x80] ss:$8 sps:$4 sm:$0xff]  }
  0x18   : > { %495 = vmatpush1.bf16.msra.mxu0 %v743_v5  ;;  %v765_v20 = vld [vmem:[%s861_s24 + $0x94] ss:$8 sps:$4 sm:$0xff]   ;;  %v767_v21 = vld [vmem:[%s861_s24 + $0x90] ss:$8 sps:$4 sm:$0xff]   ;;  %v768_v22 = vld [vmem:[%s861_s24 + $0xa4] ss:$8 sps:$4 sm:$0xff]  }
  0x19   : > { %496 = vmatprep.subr.bf16.mxu0 %v744_v6  ;;  %v770_v23 = vld [vmem:[%s861_s24 + $0xa0] ss:$8 sps:$4 sm:$0xff]   ;;  %v771_v24 = vld [vmem:[%s861_s24 + $0xb4] ss:$8 sps:$4 sm:$0xff]   ;;  %v773_v25 = vld [vmem:[%s861_s24 + $0xb0] ss:$8 sps:$4 sm:$0xff]  }
  0x1a   : > { %v774_v26 = vld [vmem:[%s861_s24 + $0xc4] ss:$8 sps:$4 sm:$0xff]   ;;  %v337_v27 = vld [vmem:[%s861_s24 + $0xd0] sm:$0xff]  ;;  %v776_v28 = vld [vmem:[%s861_s24 + $0xc0] ss:$8 sps:$4 sm:$0xff]   ;;  %v535_v36 = vmul.f32 3.0, %v533_v33 }
  0x1b   : > { %v705_v29 = vcombine.high %v337_v27, %v337_v27  ;;  %v704_v30 = vcombine.low %v337_v27, %v337_v27  ;;  %v338_v35 = vld [vmem:[%s287_s5] sm:$0xff]  ;;  %v339_v37 = vld [vmem:[%s287_s5 + $0x8] sm:$0xff]  ;;  %v536_v39 = vmul.f32 3.0, %v534_v34 }
  0x1c   : > { %497 = vmatpush1.bf16.msra.mxu0 %v746_v7 }
  0x1d   : > { %498 = vmatprep.subr.bf16.mxu0 %v747_v8  ;;  %v487_v31 = vsel %vm485_vm1, %v704_v30, 0 }
  0x20   : > { %499 = vmatpush1.bf16.msra.mxu0 %v749_v9 }
  0x21   : > { %500 = vmatprep.subr.bf16.mxu0 %v750_v10 }
  0x24   : > { %501 = vmatpush1.bf16.msra.mxu0 %v752_v11 }
  0x25   : > { %502 = vmatprep.subr.bf16.mxu0 %v753_v12 }
  0x28   : > { %503 = vmatpush1.bf16.msra.mxu0 %v755_v13 }
  0x29   : > { %504 = vmatprep.subr.bf16.mxu0 %v756_v14 }
  0x2c   : > { %505 = vmatpush1.bf16.msra.mxu0 %v758_v15 }
  0x2d   : > { %506 = vmatprep.subr.bf16.mxu0 %v759_v16 }
  0x30   : > { %507 = vmatpush1.bf16.msra.mxu0 %v761_v17 }
  0x31   : > { %508 = vmatprep.subr.bf16.mxu0 %v762_v18 }
  0x34   : > { %509 = vmatpush1.bf16.msra.mxu0 %v764_v19 }
  0x35   : > { %510 = vmatprep.subr.bf16.mxu0 %v765_v20 }
  0x38   : > { %511 = vmatpush1.bf16.msra.mxu0 %v767_v21 }
  0x39   : > { %512 = vmatprep.subr.bf16.mxu0 %v768_v22 }
  0x3c   : > { %513 = vmatpush1.bf16.msra.mxu0 %v770_v23 }
  0x3d   : > { %514 = vmatprep.subr.bf16.mxu0 %v771_v24 }
  0x40   : > { %515 = vmatpush1.bf16.msra.mxu0 %v773_v25 }
  0x41   : > { %516 = vmatprep.subr.bf16.mxu0 %v774_v26 }
  0x44   : > { %517 = vmatpush1.bf16.msra.mxu0 %v776_v28 }
  0x45   : > { %706 = vmatprep.subr.msk.bf16.mxu0 %vm485_vm1, %v705_v29 }
  0x48   : > { %519 = vmatpush1.bf16.msra.mxu0 %v487_v31 }
  0x4b   : > { %525 = vmatmul.mubr.bf16.vlgmr.msra.gmra.mrb[0].mxu0 %v676_v32 }
 0x11e   : > { %v526_v38 = vpop.f32.mrb[0].mxu0 }
 0x11f   : > { %v527_v40 = vadd.f32 %v526_v38, %v338_v35  ;;  %v528_v41 = vpop.f32.mrb[1].mxu0 }
 0x120   : > { %v529_v42 = vadd.f32 %v528_v41, %v339_v37  ;;  %v530_v43 = vpop.f32.mrb[2].mxu0 }
 0x121   : > { %v537_v44 = vadd.f32 %v535_v36, %v527_v40  ;;  %v531_v45 = vpop.f32.mrb[3].mxu0 }
 0x122   : > { %v538_v46 = vadd.f32 %v536_v39, %v529_v42 }
 0x123   : > { %539 = vst [vmem:[%s307_s8] sm:$0xff] %v537_v44 }
 0x124   : > { %540 = vst [vmem:[%s307_s8 + $0x8] sm:$0xff] %v538_v46 }
 0x125 PF: > { %s14_s17 = sadd.s32 1, %s803_s17   ;;  %s916_s15 = smov %s799_s16 }
 0x126   : > { %p11_p5 = scmp.ge.s32.totalorder %s14_s17, 4   ;;  %s917_s16 = smov %s919_s18 }
 0x128   :  { %13 = sbr.rel (!%p11_p5) target bundleno = 2 (0x2), region = 72 }

</bundles_post_ra>
